<compile_context>
chip_gen: v7x
topology: tpu7x:2x2x1
jax: 0.10.0
libtpu: 0.0.40
codegen_flags: <defaults>
</compile_context>

<pallas_src>
import functools
import math

import jax
import jax.numpy as jnp
from jax import lax
from jax.experimental import pallas as pl
from jax.experimental.pallas import tpu as pltpu


def _layer_norm(x, gamma, beta, eps=1e-5):
    mean = jnp.mean(x, axis=-1, keepdims=True)
    c = x - mean
    var = jnp.mean(c * c, axis=-1, keepdims=True)
    return c * lax.rsqrt(var + eps) * gamma + beta


def _encoder_kernel(x_ref, wqkv_ref, bqkv_ref, wo_ref, bo_ref, g1_ref, be1_ref,
                    w1_ref, b1_ref, w2_ref, b2_ref, g2_ref, be2_ref,
                    o_ref,
                    qkv_scr, qg_scr, kg_scr, vg_scr, cg_scr, ctx_scr,
                    *, num_head):
    _, L, M = x_ref.shape
    H = num_head
    D = M // H
    R = L // H                       # rows of x per contiguous-.view() head group
    bf16 = jnp.bfloat16

    x = x_ref[0]                                          # (L, M) f32

    # ---- fused Q/K/V projection: bf16 operands, f32 accumulation (MXU) ----
    qkv = jnp.dot(x.astype(bf16), wqkv_ref[...],
                  preferred_element_type=jnp.float32) + bqkv_ref[...]
    qkv_scr[...] = qkv                                    # (L, 3M) stays in VMEM

    # ---- multi-head attention, reproducing torch's contiguous .view() split ----
    # Group g of Q.view(B*H, L, D) corresponds to rows [g*R, (g+1)*R) of the
    # (L, M) matrix, re-chunked into L rows of width D.  We process each group
    # in chunk-major order (a fixed row permutation); softmax-attention is
    # permutation-equivariant, so the mirrored scatter below recovers exactly
    # the torch ordering.  All moves are static VMEM slice copies.
    for g in range(H):
        r0 = g * R
        for c in range(H):
            qg_scr[c * R:(c + 1) * R, :] = qkv_scr[r0:r0 + R, c * D:(c + 1) * D]
            kg_scr[c * R:(c + 1) * R, :] = qkv_scr[r0:r0 + R, M + c * D:M + (c + 1) * D]
            vg_scr[c * R:(c + 1) * R, :] = qkv_scr[r0:r0 + R, 2 * M + c * D:2 * M + (c + 1) * D]
        qg = qg_scr[...].astype(bf16)
        kg = kg_scr[...].astype(bf16)
        vg = vg_scr[...].astype(bf16)
        # 1/sqrt(D) is pre-folded into Wq/bq in prepare_params().
        s = lax.dot_general(qg, kg, (((1,), (1,)), ((), ())),
                            preferred_element_type=jnp.float32)     # (L, L)
        s = s - jnp.max(s, axis=-1, keepdims=True)
        p = jnp.exp(s)
        p = p * pl.reciprocal(jnp.sum(p, axis=-1, keepdims=True), approx=True)
        cg_scr[...] = jnp.dot(p.astype(bf16), vg,
                              preferred_element_type=jnp.float32)   # (L, D)
        for c in range(H):
            ctx_scr[r0:r0 + R, c * D:(c + 1) * D] = cg_scr[c * R:(c + 1) * R, :]

    # ---- output projection + residual + LayerNorm ----
    ctx = ctx_scr[...].astype(bf16)                       # (L, M)
    o = jnp.dot(ctx, wo_ref[...], preferred_element_type=jnp.float32) + bo_ref[...]
    # TODO(synk): nn.Dropout treated as identity (p=0.0 / inference).
    o = o + x
    o = _layer_norm(o, g1_ref[...], be1_ref[...])

    # ---- position-wise feed-forward + residual + LayerNorm ----
    h = jnp.dot(o.astype(bf16), w1_ref[...],
                preferred_element_type=jnp.float32) + b1_ref[...]
    h = jnp.maximum(h, 0.0)
    f = jnp.dot(h.astype(bf16), w2_ref[...],
                preferred_element_type=jnp.float32) + b2_ref[...]
    f = f + o
    o_ref[0] = _layer_norm(f, g2_ref[...], be2_ref[...])


def prepare_params(p, num_head):
    """Hoisted out of jit: fuse Wq|Wk|Wv, fold 1/sqrt(D) into Wq/bq, cast
    matmul weights to bf16.  Biases / LayerNorm params stay f32."""
    M = p["wq"].shape[0]
    D = M // num_head
    scale = float(D) ** -0.5
    wqkv = jnp.concatenate([p["wq"] * scale, p["wk"], p["wv"]], axis=1)
    bqkv = jnp.concatenate([p["bq"] * scale, p["bk"], p["bv"]], axis=0)
    return dict(
        wqkv=wqkv.astype(jnp.bfloat16),
        bqkv=bqkv.reshape(1, -1).astype(jnp.float32),
        wo=p["wo"].astype(jnp.bfloat16), bo=p["bo"].reshape(1, -1),
        g1=p["g1"].reshape(1, -1), be1=p["be1"].reshape(1, -1),
        w1=p["w1"].astype(jnp.bfloat16), b1=p["b1"].reshape(1, -1),
        w2=p["w2"].astype(jnp.bfloat16), b2=p["b2"].reshape(1, -1),
        g2=p["g2"].reshape(1, -1), be2=p["be2"].reshape(1, -1),
    )


def encoder_forward(x, prep, num_head):
    B, L, M = x.shape
    H = num_head
    assert M % H == 0
    D = M // H
    # TODO(synk): kernel assumes L % H == 0 so each contiguous-.view() head
    # group maps to whole rows of x (holds for the demo and typical configs).
    assert L % H == 0, "seq_len must be a multiple of num_head for this kernel"
    hidden = prep["w1"].shape[1]

    def wspec(shape):
        return pl.BlockSpec(shape, lambda b: (0, 0))

    kern = functools.partial(_encoder_kernel, num_head=H)
    return pl.pallas_call(
        kern,
        out_shape=jax.ShapeDtypeStruct((B, L, M), jnp.float32),
        grid=(B,),
        in_specs=[
            pl.BlockSpec((1, L, M), lambda b: (b, 0, 0)),   # x
            wspec((M, 3 * M)),                              # Wqkv  (bf16)
            wspec((1, 3 * M)),                              # bqkv
            wspec((M, M)),                                  # Wo    (bf16)
            wspec((1, M)),                                  # bo
            wspec((1, M)), wspec((1, M)),                   # ln1 gamma/beta
            wspec((M, hidden)),                             # W1    (bf16)
            wspec((1, hidden)),                             # b1
            wspec((hidden, M)),                             # W2    (bf16)
            wspec((1, M)),                                  # b2
            wspec((1, M)), wspec((1, M)),                   # ln2 gamma/beta
        ],
        out_specs=pl.BlockSpec((1, L, M), lambda b: (b, 0, 0)),
        scratch_shapes=[
            pltpu.VMEM((L, 3 * M), jnp.float32),   # qkv
            pltpu.VMEM((L, D), jnp.float32),       # per-group Q
            pltpu.VMEM((L, D), jnp.float32),       # per-group K
            pltpu.VMEM((L, D), jnp.float32),       # per-group V
            pltpu.VMEM((L, D), jnp.float32),       # per-group context
            pltpu.VMEM((L, M), jnp.float32),       # assembled context
        ],
        compiler_params=pltpu.CompilerParams(
            dimension_semantics=("parallel",)),
    )(x, prep["wqkv"], prep["bqkv"], prep["wo"], prep["bo"],
      prep["g1"], prep["be1"], prep["w1"], prep["b1"],
      prep["w2"], prep["b2"], prep["g2"], prep["be2"])


def encoder_ref(x, p, num_head):
    """Pure-JAX f32 reference mirroring the PyTorch Encoder forward exactly."""
    hp = lax.Precision.HIGHEST
    B, L, M = x.shape
    D = M // num_head
    q = jnp.dot(x, p["wq"], precision=hp) + p["bq"]
    k = jnp.dot(x, p["wk"], precision=hp) + p["bk"]
    v = jnp.dot(x, p["wv"], precision=hp) + p["bv"]
    qh = q.reshape(B * num_head, L, D)
    kh = k.reshape(B * num_head, L, D)
    vh = v.reshape(B * num_head, L, D)
    att = jnp.einsum("nld,nmd->nlm", qh, kh, precision=hp) * (float(D) ** -0.5)
    att = jax.nn.softmax(att, axis=-1)
    ctx = jnp.einsum("nlm,nmd->nld", att, vh, precision=hp).reshape(B, L, M)
    o = jnp.dot(ctx, p["wo"], precision=hp) + p["bo"]
    o = o + x
    o = _layer_norm(o, p["g1"], p["be1"])
    h = jnp.maximum(jnp.dot(o, p["w1"], precision=hp) + p["b1"], 0.0)
    f = jnp.dot(h, p["w2"], precision=hp) + p["b2"] + o
    return _layer_norm(f, p["g2"], p["be2"])


if __name__ == "__main__":
    dim_model, num_head, hidden = 128, 4, 256
    B, L = 2, 16

    key = jax.random.PRNGKey(0)
    ks = jax.random.split(key, 20)

    def linear_init(kw, kb, fan_in, fan_out):
        lim = 1.0 / math.sqrt(fan_in)
        w = jax.random.uniform(kw, (fan_in, fan_out), jnp.float32, -lim, lim)
        b = jax.random.uniform(kb, (fan_out,), jnp.float32, -lim, lim)
        return w, b

    wq, bq = linear_init(ks[0], ks[1], dim_model, dim_model)
    wk, bk = linear_init(ks[2], ks[3], dim_model, dim_model)
    wv, bv = linear_init(ks[4], ks[5], dim_model, dim_model)
    wo, bo = linear_init(ks[6], ks[7], dim_model, dim_model)
    w1, b1 = linear_init(ks[8], ks[9], dim_model, hidden)
    w2, b2 = linear_init(ks[10], ks[11], hidden, dim_model)
    g1 = 1.0 + 0.05 * jax.random.normal(ks[12], (dim_model,), jnp.float32)
    be1 = 0.05 * jax.random.normal(ks[13], (dim_model,), jnp.float32)
    g2 = 1.0 + 0.05 * jax.random.normal(ks[14], (dim_model,), jnp.float32)
    be2 = 0.05 * jax.random.normal(ks[15], (dim_model,), jnp.float32)
    x = jax.random.normal(ks[16], (B, L, dim_model), jnp.float32)

    params = dict(wq=wq, bq=bq, wk=wk, bk=bk, wv=wv, bv=bv, wo=wo, bo=bo,
                  w1=w1, b1=b1, w2=w2, b2=b2,
                  g1=g1, be1=be1, g2=g2, be2=be2)

    prep = prepare_params(params, num_head)          # outside jit (hoisted)
    fwd = jax.jit(functools.partial(encoder_forward, num_head=num_head))
    out = jax.block_until_ready(fwd(x, prep))

    ref = encoder_ref(x, params, num_head)
    assert out.shape == (B, L, dim_model), out.shape
    # Tolerance reflects bf16 MXU operands (f32 accumulate) vs the f32 reference.
    assert jnp.allclose(out, ref, atol=3e-2, rtol=3e-2), \
        float(jnp.max(jnp.abs(out - ref)))

    print("KERNEL_OK")
</pallas_src>

<mosaic_0001>
module attributes {stable_mosaic.version = 11 : i64} {
  func.func @_encoder_kernel(%arg0: i32, %arg1: memref<1x16x128xf32, #tpu.memory_space<vmem>>, %arg2: memref<128x384xbf16, #tpu.memory_space<vmem>>, %arg3: memref<1x384xf32, #tpu.memory_space<vmem>>, %arg4: memref<128x128xbf16, #tpu.memory_space<vmem>>, %arg5: memref<1x128xf32, #tpu.memory_space<vmem>>, %arg6: memref<1x128xf32, #tpu.memory_space<vmem>>, %arg7: memref<1x128xf32, #tpu.memory_space<vmem>>, %arg8: memref<128x256xbf16, #tpu.memory_space<vmem>>, %arg9: memref<1x256xf32, #tpu.memory_space<vmem>>, %arg10: memref<256x128xbf16, #tpu.memory_space<vmem>>, %arg11: memref<1x128xf32, #tpu.memory_space<vmem>>, %arg12: memref<1x128xf32, #tpu.memory_space<vmem>>, %arg13: memref<1x128xf32, #tpu.memory_space<vmem>>, %arg14: memref<1x16x128xf32, #tpu.memory_space<vmem>>, %arg15: memref<16x384xf32, #tpu.memory_space<vmem>>, %arg16: memref<16x32xf32, #tpu.memory_space<vmem>>, %arg17: memref<16x32xf32, #tpu.memory_space<vmem>>, %arg18: memref<16x32xf32, #tpu.memory_space<vmem>>, %arg19: memref<16x32xf32, #tpu.memory_space<vmem>>, %arg20: memref<16x128xf32, #tpu.memory_space<vmem>>) attributes {dimension_semantics = [#tpu.dimension_semantics<parallel>], iteration_bounds = array<i64: 2>, scalar_prefetch = 0 : i64, scratch_operands = 6 : i64, tpu.core_type = #tpu.core_type<tc>, window_params = [{transform_indices = @transform_0, window_bounds = array<i64: 1, 16, 128>}, {pipeline_mode = #tpu.pipeline_mode<synchronous>, transform_indices = @transform_1, window_bounds = array<i64: 128, 384>}, {pipeline_mode = #tpu.pipeline_mode<synchronous>, transform_indices = @transform_2, window_bounds = array<i64: 1, 384>}, {pipeline_mode = #tpu.pipeline_mode<synchronous>, transform_indices = @transform_3, window_bounds = array<i64: 128, 128>}, {pipeline_mode = #tpu.pipeline_mode<synchronous>, transform_indices = @transform_4, window_bounds = array<i64: 1, 128>}, {pipeline_mode = #tpu.pipeline_mode<synchronous>, transform_indices = @transform_5, window_bounds = array<i64: 1, 128>}, {pipeline_mode = #tpu.pipeline_mode<synchronous>, transform_indices = @transform_6, window_bounds = array<i64: 1, 128>}, {pipeline_mode = #tpu.pipeline_mode<synchronous>, transform_indices = @transform_7, window_bounds = array<i64: 128, 256>}, {pipeline_mode = #tpu.pipeline_mode<synchronous>, transform_indices = @transform_8, window_bounds = array<i64: 1, 256>}, {pipeline_mode = #tpu.pipeline_mode<synchronous>, transform_indices = @transform_9, window_bounds = array<i64: 256, 128>}, {pipeline_mode = #tpu.pipeline_mode<synchronous>, transform_indices = @transform_10, window_bounds = array<i64: 1, 128>}, {pipeline_mode = #tpu.pipeline_mode<synchronous>, transform_indices = @transform_11, window_bounds = array<i64: 1, 128>}, {pipeline_mode = #tpu.pipeline_mode<synchronous>, transform_indices = @transform_12, window_bounds = array<i64: 1, 128>}, {transform_indices = @transform_13, window_bounds = array<i64: 1, 16, 128>}]} {
    %c0 = arith.constant 0 : index
    %c0_0 = arith.constant 0 : index
    %c0_1 = arith.constant 0 : index
    %0 = vector.load %arg1[%c0, %c0_0, %c0_1] : memref<1x16x128xf32, #tpu.memory_space<vmem>>, vector<1x16x128xf32>
    %1 = vector.shape_cast %0 : vector<1x16x128xf32> to vector<16x128xf32>
    %2 = arith.truncf %1 : vector<16x128xf32> to vector<16x128xbf16>
    %c0_2 = arith.constant 0 : index
    %c0_3 = arith.constant 0 : index
    %3 = vector.load %arg2[%c0_2, %c0_3] : memref<128x384xbf16, #tpu.memory_space<vmem>>, vector<128x384xbf16>
    %cst = arith.constant dense<0.000000e+00> : vector<16x384xf32>
    %4 = tpu.matmul %2, %3, %cst {dimension_numbers = #tpu.dot_dimension_numbers<[1], [0], [0], [1], [0, 0, 1, 1], [], []>} : vector<16x128xbf16>, vector<128x384xbf16>, vector<16x384xf32> -> vector<16x384xf32>
    %c0_4 = arith.constant 0 : index
    %c0_5 = arith.constant 0 : index
    %5 = vector.load %arg3[%c0_4, %c0_5] : memref<1x384xf32, #tpu.memory_space<vmem>>, vector<1x384xf32>
    %6 = vector.broadcast %5 : vector<1x384xf32> to vector<16x384xf32>
    %7 = arith.addf %4, %6 : vector<16x384xf32>
    %c0_6 = arith.constant 0 : index
    %c0_7 = arith.constant 0 : index
    %8 = vector.load %arg15[%c0_6, %c0_7] : memref<16x384xf32, #tpu.memory_space<vmem>>, vector<16x384xf32>
    tpu.vector_store %arg15[%c0_6, %c0_7], %7 {strides = array<i32>} : memref<16x384xf32, #tpu.memory_space<vmem>>, vector<16x384xf32>,
    %c0_8 = arith.constant 0 : index
    %c0_9 = arith.constant 0 : index
    %9 = vector.load %arg15[%c0_8, %c0_9] : memref<16x384xf32, #tpu.memory_space<vmem>>, vector<4x32xf32>
    %c0_10 = arith.constant 0 : index
    %c0_11 = arith.constant 0 : index
    %10 = vector.load %arg16[%c0_10, %c0_11] : memref<16x32xf32, #tpu.memory_space<vmem>>, vector<4x32xf32>
    tpu.vector_store %arg16[%c0_10, %c0_11], %9 {strides = array<i32>} : memref<16x32xf32, #tpu.memory_space<vmem>>, vector<4x32xf32>,
    %c0_12 = arith.constant 0 : index
    %c128 = arith.constant 128 : index
    %11 = vector.load %arg15[%c0_12, %c128] : memref<16x384xf32, #tpu.memory_space<vmem>>, vector<4x32xf32>
    %c0_13 = arith.constant 0 : index
    %c0_14 = arith.constant 0 : index
    %12 = vector.load %arg17[%c0_13, %c0_14] : memref<16x32xf32, #tpu.memory_space<vmem>>, vector<4x32xf32>
    tpu.vector_store %arg17[%c0_13, %c0_14], %11 {strides = array<i32>} : memref<16x32xf32, #tpu.memory_space<vmem>>, vector<4x32xf32>,
    %c0_15 = arith.constant 0 : index
    %c256 = arith.constant 256 : index
    %13 = vector.load %arg15[%c0_15, %c256] : memref<16x384xf32, #tpu.memory_space<vmem>>, vector<4x32xf32>
    %c0_16 = arith.constant 0 : index
    %c0_17 = arith.constant 0 : index
    %14 = vector.load %arg18[%c0_16, %c0_17] : memref<16x32xf32, #tpu.memory_space<vmem>>, vector<4x32xf32>
    tpu.vector_store %arg18[%c0_16, %c0_17], %13 {strides = array<i32>} : memref<16x32xf32, #tpu.memory_space<vmem>>, vector<4x32xf32>,
    %c0_18 = arith.constant 0 : index
    %c32 = arith.constant 32 : index
    %15 = vector.load %arg15[%c0_18, %c32] : memref<16x384xf32, #tpu.memory_space<vmem>>, vector<4x32xf32>
    %c4 = arith.constant 4 : index
    %c0_19 = arith.constant 0 : index
    %16 = vector.load %arg16[%c4, %c0_19] : memref<16x32xf32, #tpu.memory_space<vmem>>, vector<4x32xf32>
    tpu.vector_store %arg16[%c4, %c0_19], %15 {strides = array<i32>} : memref<16x32xf32, #tpu.memory_space<vmem>>, vector<4x32xf32>,
    %c0_20 = arith.constant 0 : index
    %c160 = arith.constant 160 : index
    %17 = vector.load %arg15[%c0_20, %c160] : memref<16x384xf32, #tpu.memory_space<vmem>>, vector<4x32xf32>
    %c4_21 = arith.constant 4 : index
    %c0_22 = arith.constant 0 : index
    %18 = vector.load %arg17[%c4_21, %c0_22] : memref<16x32xf32, #tpu.memory_space<vmem>>, vector<4x32xf32>
    tpu.vector_store %arg17[%c4_21, %c0_22], %17 {strides = array<i32>} : memref<16x32xf32, #tpu.memory_space<vmem>>, vector<4x32xf32>,
    %c0_23 = arith.constant 0 : index
    %c288 = arith.constant 288 : index
    %19 = vector.load %arg15[%c0_23, %c288] : memref<16x384xf32, #tpu.memory_space<vmem>>, vector<4x32xf32>
    %c4_24 = arith.constant 4 : index
    %c0_25 = arith.constant 0 : index
    %20 = vector.load %arg18[%c4_24, %c0_25] : memref<16x32xf32, #tpu.memory_space<vmem>>, vector<4x32xf32>
    tpu.vector_store %arg18[%c4_24, %c0_25], %19 {strides = array<i32>} : memref<16x32xf32, #tpu.memory_space<vmem>>, vector<4x32xf32>,
    %c0_26 = arith.constant 0 : index
    %c64 = arith.constant 64 : index
    %21 = vector.load %arg15[%c0_26, %c64] : memref<16x384xf32, #tpu.memory_space<vmem>>, vector<4x32xf32>
    %c8 = arith.constant 8 : index
    %c0_27 = arith.constant 0 : index
    %22 = vector.load %arg16[%c8, %c0_27] : memref<16x32xf32, #tpu.memory_space<vmem>>, vector<4x32xf32>
    tpu.vector_store %arg16[%c8, %c0_27], %21 {strides = array<i32>} : memref<16x32xf32, #tpu.memory_space<vmem>>, vector<4x32xf32>,
    %c0_28 = arith.constant 0 : index
    %c192 = arith.constant 192 : index
    %23 = vector.load %arg15[%c0_28, %c192] : memref<16x384xf32, #tpu.memory_space<vmem>>, vector<4x32xf32>
    %c8_29 = arith.constant 8 : index
    %c0_30 = arith.constant 0 : index
    %24 = vector.load %arg17[%c8_29, %c0_30] : memref<16x32xf32, #tpu.memory_space<vmem>>, vector<4x32xf32>
    tpu.vector_store %arg17[%c8_29, %c0_30], %23 {strides = array<i32>} : memref<16x32xf32, #tpu.memory_space<vmem>>, vector<4x32xf32>,
    %c0_31 = arith.constant 0 : index
    %c320 = arith.constant 320 : index
    %25 = vector.load %arg15[%c0_31, %c320] : memref<16x384xf32, #tpu.memory_space<vmem>>, vector<4x32xf32>
    %c8_32 = arith.constant 8 : index
    %c0_33 = arith.constant 0 : index
    %26 = vector.load %arg18[%c8_32, %c0_33] : memref<16x32xf32, #tpu.memory_space<vmem>>, vector<4x32xf32>
    tpu.vector_store %arg18[%c8_32, %c0_33], %25 {strides = array<i32>} : memref<16x32xf32, #tpu.memory_space<vmem>>, vector<4x32xf32>,
    %c0_34 = arith.constant 0 : index
    %c96 = arith.constant 96 : index
    %27 = vector.load %arg15[%c0_34, %c96] : memref<16x384xf32, #tpu.memory_space<vmem>>, vector<4x32xf32>
    %c12 = arith.constant 12 : index
    %c0_35 = arith.constant 0 : index
    %28 = vector.load %arg16[%c12, %c0_35] : memref<16x32xf32, #tpu.memory_space<vmem>>, vector<4x32xf32>
    tpu.vector_store %arg16[%c12, %c0_35], %27 {strides = array<i32>} : memref<16x32xf32, #tpu.memory_space<vmem>>, vector<4x32xf32>,
    %c0_36 = arith.constant 0 : index
    %c224 = arith.constant 224 : index
    %29 = vector.load %arg15[%c0_36, %c224] : memref<16x384xf32, #tpu.memory_space<vmem>>, vector<4x32xf32>
    %c12_37 = arith.constant 12 : index
    %c0_38 = arith.constant 0 : index
    %30 = vector.load %arg17[%c12_37, %c0_38] : memref<16x32xf32, #tpu.memory_space<vmem>>, vector<4x32xf32>
    tpu.vector_store %arg17[%c12_37, %c0_38], %29 {strides = array<i32>} : memref<16x32xf32, #tpu.memory_space<vmem>>, vector<4x32xf32>,
    %c0_39 = arith.constant 0 : index
    %c352 = arith.constant 352 : index
    %31 = vector.load %arg15[%c0_39, %c352] : memref<16x384xf32, #tpu.memory_space<vmem>>, vector<4x32xf32>
    %c12_40 = arith.constant 12 : index
    %c0_41 = arith.constant 0 : index
    %32 = vector.load %arg18[%c12_40, %c0_41] : memref<16x32xf32, #tpu.memory_space<vmem>>, vector<4x32xf32>
    tpu.vector_store %arg18[%c12_40, %c0_41], %31 {strides = array<i32>} : memref<16x32xf32, #tpu.memory_space<vmem>>, vector<4x32xf32>,
    %c0_42 = arith.constant 0 : index
    %c0_43 = arith.constant 0 : index
    %33 = vector.load %arg16[%c0_42, %c0_43] : memref<16x32xf32, #tpu.memory_space<vmem>>, vector<16x32xf32>
    %34 = arith.truncf %33 : vector<16x32xf32> to vector<16x32xbf16>
    %c0_44 = arith.constant 0 : index
    %c0_45 = arith.constant 0 : index
    %35 = vector.load %arg17[%c0_44, %c0_45] : memref<16x32xf32, #tpu.memory_space<vmem>>, vector<16x32xf32>
    %36 = arith.truncf %35 : vector<16x32xf32> to vector<16x32xbf16>
    %c0_46 = arith.constant 0 : index
    %c0_47 = arith.constant 0 : index
    %37 = vector.load %arg18[%c0_46, %c0_47] : memref<16x32xf32, #tpu.memory_space<vmem>>, vector<16x32xf32>
    %38 = arith.truncf %37 : vector<16x32xf32> to vector<16x32xbf16>
    %cst_48 = arith.constant dense<0.000000e+00> : vector<16x16xf32>
    %39 = tpu.matmul %34, %36, %cst_48 {dimension_numbers = #tpu.dot_dimension_numbers<[1], [1], [0], [0], [0, 0, 1, 0], [], []>} : vector<16x32xbf16>, vector<16x32xbf16>, vector<16x16xf32> -> vector<16x16xf32>
    %cst_49 = arith.constant dense<0xFF800000> : vector<16xf32>
    %40 = vector.multi_reduction <maximumf>, %39, %cst_49 [1] : vector<16x16xf32> to vector<16xf32>
    %41 = vector.shape_cast %40 : vector<16xf32> to vector<16x1xf32>
    %42 = vector.broadcast %41 : vector<16x1xf32> to vector<16x16xf32>
    %43 = arith.subf %39, %42 : vector<16x16xf32>
    %44 = math.exp %43 : vector<16x16xf32>
    %cst_50 = arith.constant dense<0.000000e+00> : vector<16xf32>
    %45 = vector.multi_reduction <add>, %44, %cst_50 [1] : vector<16x16xf32> to vector<16xf32>
    %46 = vector.shape_cast %45 : vector<16xf32> to vector<16x1xf32>
    %47 = tpu.reciprocal %46 {approx = true} : vector<16x1xf32> -> vector<16x1xf32>
    %48 = vector.broadcast %47 : vector<16x1xf32> to vector<16x16xf32>
    %49 = arith.mulf %44, %48 : vector<16x16xf32>
    %50 = arith.truncf %49 : vector<16x16xf32> to vector<16x16xbf16>
    %cst_51 = arith.constant dense<0.000000e+00> : vector<16x32xf32>
    %51 = tpu.matmul %50, %38, %cst_51 {dimension_numbers = #tpu.dot_dimension_numbers<[1], [0], [0], [1], [0, 0, 1, 1], [], []>} : vector<16x16xbf16>, vector<16x32xbf16>, vector<16x32xf32> -> vector<16x32xf32>
    %c0_52 = arith.constant 0 : index
    %c0_53 = arith.constant 0 : index
    %52 = vector.load %arg19[%c0_52, %c0_53] : memref<16x32xf32, #tpu.memory_space<vmem>>, vector<16x32xf32>
    tpu.vector_store %arg19[%c0_52, %c0_53], %51 {strides = array<i32>} : memref<16x32xf32, #tpu.memory_space<vmem>>, vector<16x32xf32>,
    %c0_54 = arith.constant 0 : index
    %c0_55 = arith.constant 0 : index
    %53 = vector.load %arg19[%c0_54, %c0_55] : memref<16x32xf32, #tpu.memory_space<vmem>>, vector<4x32xf32>
    %c0_56 = arith.constant 0 : index
    %c0_57 = arith.constant 0 : index
    %54 = vector.load %arg20[%c0_56, %c0_57] : memref<16x128xf32, #tpu.memory_space<vmem>>, vector<4x32xf32>
    tpu.vector_store %arg20[%c0_56, %c0_57], %53 {strides = array<i32>} : memref<16x128xf32, #tpu.memory_space<vmem>>, vector<4x32xf32>,
    %c4_58 = arith.constant 4 : index
    %c0_59 = arith.constant 0 : index
    %55 = vector.load %arg19[%c4_58, %c0_59] : memref<16x32xf32, #tpu.memory_space<vmem>>, vector<4x32xf32>
    %c0_60 = arith.constant 0 : index
    %c32_61 = arith.constant 32 : index
    %56 = vector.load %arg20[%c0_60, %c32_61] : memref<16x128xf32, #tpu.memory_space<vmem>>, vector<4x32xf32>
    tpu.vector_store %arg20[%c0_60, %c32_61], %55 {strides = array<i32>} : memref<16x128xf32, #tpu.memory_space<vmem>>, vector<4x32xf32>,
    %c8_62 = arith.constant 8 : index
    %c0_63 = arith.constant 0 : index
    %57 = vector.load %arg19[%c8_62, %c0_63] : memref<16x32xf32, #tpu.memory_space<vmem>>, vector<4x32xf32>
    %c0_64 = arith.constant 0 : index
    %c64_65 = arith.constant 64 : index
    %58 = vector.load %arg20[%c0_64, %c64_65] : memref<16x128xf32, #tpu.memory_space<vmem>>, vector<4x32xf32>
    tpu.vector_store %arg20[%c0_64, %c64_65], %57 {strides = array<i32>} : memref<16x128xf32, #tpu.memory_space<vmem>>, vector<4x32xf32>,
    %c12_66 = arith.constant 12 : index
    %c0_67 = arith.constant 0 : index
    %59 = vector.load %arg19[%c12_66, %c0_67] : memref<16x32xf32, #tpu.memory_space<vmem>>, vector<4x32xf32>
    %c0_68 = arith.constant 0 : index
    %c96_69 = arith.constant 96 : index
    %60 = vector.load %arg20[%c0_68, %c96_69] : memref<16x128xf32, #tpu.memory_space<vmem>>, vector<4x32xf32>
    tpu.vector_store %arg20[%c0_68, %c96_69], %59 {strides = array<i32>} : memref<16x128xf32, #tpu.memory_space<vmem>>, vector<4x32xf32>,
    %c4_70 = arith.constant 4 : index
    %c0_71 = arith.constant 0 : index
    %61 = vector.load %arg15[%c4_70, %c0_71] : memref<16x384xf32, #tpu.memory_space<vmem>>, vector<4x32xf32>
    %c0_72 = arith.constant 0 : index
    %c0_73 = arith.constant 0 : index
    %62 = vector.load %arg16[%c0_72, %c0_73] : memref<16x32xf32, #tpu.memory_space<vmem>>, vector<4x32xf32>
    tpu.vector_store %arg16[%c0_72, %c0_73], %61 {strides = array<i32>} : memref<16x32xf32, #tpu.memory_space<vmem>>, vector<4x32xf32>,
    %c4_74 = arith.constant 4 : index
    %c128_75 = arith.constant 128 : index
    %63 = vector.load %arg15[%c4_74, %c128_75] : memref<16x384xf32, #tpu.memory_space<vmem>>, vector<4x32xf32>
    %c0_76 = arith.constant 0 : index
    %c0_77 = arith.constant 0 : index
    %64 = vector.load %arg17[%c0_76, %c0_77] : memref<16x32xf32, #tpu.memory_space<vmem>>, vector<4x32xf32>
    tpu.vector_store %arg17[%c0_76, %c0_77], %63 {strides = array<i32>} : memref<16x32xf32, #tpu.memory_space<vmem>>, vector<4x32xf32>,
    %c4_78 = arith.constant 4 : index
    %c256_79 = arith.constant 256 : index
    %65 = vector.load %arg15[%c4_78, %c256_79] : memref<16x384xf32, #tpu.memory_space<vmem>>, vector<4x32xf32>
    %c0_80 = arith.constant 0 : index
    %c0_81 = arith.constant 0 : index
    %66 = vector.load %arg18[%c0_80, %c0_81] : memref<16x32xf32, #tpu.memory_space<vmem>>, vector<4x32xf32>
    tpu.vector_store %arg18[%c0_80, %c0_81], %65 {strides = array<i32>} : memref<16x32xf32, #tpu.memory_space<vmem>>, vector<4x32xf32>,
    %c4_82 = arith.constant 4 : index
    %c32_83 = arith.constant 32 : index
    %67 = vector.load %arg15[%c4_82, %c32_83] : memref<16x384xf32, #tpu.memory_space<vmem>>, vector<4x32xf32>
    %c4_84 = arith.constant 4 : index
    %c0_85 = arith.constant 0 : index
    %68 = vector.load %arg16[%c4_84, %c0_85] : memref<16x32xf32, #tpu.memory_space<vmem>>, vector<4x32xf32>
    tpu.vector_store %arg16[%c4_84, %c0_85], %67 {strides = array<i32>} : memref<16x32xf32, #tpu.memory_space<vmem>>, vector<4x32xf32>,
    %c4_86 = arith.constant 4 : index
    %c160_87 = arith.constant 160 : index
    %69 = vector.load %arg15[%c4_86, %c160_87] : memref<16x384xf32, #tpu.memory_space<vmem>>, vector<4x32xf32>
    %c4_88 = arith.constant 4 : index
    %c0_89 = arith.constant 0 : index
    %70 = vector.load %arg17[%c4_88, %c0_89] : memref<16x32xf32, #tpu.memory_space<vmem>>, vector<4x32xf32>
    tpu.vector_store %arg17[%c4_88, %c0_89], %69 {strides = array<i32>} : memref<16x32xf32, #tpu.memory_space<vmem>>, vector<4x32xf32>,
    %c4_90 = arith.constant 4 : index
    %c288_91 = arith.constant 288 : index
    %71 = vector.load %arg15[%c4_90, %c288_91] : memref<16x384xf32, #tpu.memory_space<vmem>>, vector<4x32xf32>
    %c4_92 = arith.constant 4 : index
    %c0_93 = arith.constant 0 : index
    %72 = vector.load %arg18[%c4_92, %c0_93] : memref<16x32xf32, #tpu.memory_space<vmem>>, vector<4x32xf32>
    tpu.vector_store %arg18[%c4_92, %c0_93], %71 {strides = array<i32>} : memref<16x32xf32, #tpu.memory_space<vmem>>, vector<4x32xf32>,
    %c4_94 = arith.constant 4 : index
    %c64_95 = arith.constant 64 : index
    %73 = vector.load %arg15[%c4_94, %c64_95] : memref<16x384xf32, #tpu.memory_space<vmem>>, vector<4x32xf32>
    %c8_96 = arith.constant 8 : index
    %c0_97 = arith.constant 0 : index
    %74 = vector.load %arg16[%c8_96, %c0_97] : memref<16x32xf32, #tpu.memory_space<vmem>>, vector<4x32xf32>
    tpu.vector_store %arg16[%c8_96, %c0_97], %73 {strides = array<i32>} : memref<16x32xf32, #tpu.memory_space<vmem>>, vector<4x32xf32>,
    %c4_98 = arith.constant 4 : index
    %c192_99 = arith.constant 192 : index
    %75 = vector.load %arg15[%c4_98, %c192_99] : memref<16x384xf32, #tpu.memory_space<vmem>>, vector<4x32xf32>
    %c8_100 = arith.constant 8 : index
    %c0_101 = arith.constant 0 : index
    %76 = vector.load %arg17[%c8_100, %c0_101] : memref<16x32xf32, #tpu.memory_space<vmem>>, vector<4x32xf32>
    tpu.vector_store %arg17[%c8_100, %c0_101], %75 {strides = array<i32>} : memref<16x32xf32, #tpu.memory_space<vmem>>, vector<4x32xf32>,
    %c4_102 = arith.constant 4 : index
    %c320_103 = arith.constant 320 : index
    %77 = vector.load %arg15[%c4_102, %c320_103] : memref<16x384xf32, #tpu.memory_space<vmem>>, vector<4x32xf32>
    %c8_104 = arith.constant 8 : index
    %c0_105 = arith.constant 0 : index
    %78 = vector.load %arg18[%c8_104, %c0_105] : memref<16x32xf32, #tpu.memory_space<vmem>>, vector<4x32xf32>
    tpu.vector_store %arg18[%c8_104, %c0_105], %77 {strides = array<i32>} : memref<16x32xf32, #tpu.memory_space<vmem>>, vector<4x32xf32>,
    %c4_106 = arith.constant 4 : index
    %c96_107 = arith.constant 96 : index
    %79 = vector.load %arg15[%c4_106, %c96_107] : memref<16x384xf32, #tpu.memory_space<vmem>>, vector<4x32xf32>
    %c12_108 = arith.constant 12 : index
    %c0_109 = arith.constant 0 : index
    %80 = vector.load %arg16[%c12_108, %c0_109] : memref<16x32xf32, #tpu.memory_space<vmem>>, vector<4x32xf32>
    tpu.vector_store %arg16[%c12_108, %c0_109], %79 {strides = array<i32>} : memref<16x32xf32, #tpu.memory_space<vmem>>, vector<4x32xf32>,
    %c4_110 = arith.constant 4 : index
    %c224_111 = arith.constant 224 : index
    %81 = vector.load %arg15[%c4_110, %c224_111] : memref<16x384xf32, #tpu.memory_space<vmem>>, vector<4x32xf32>
    %c12_112 = arith.constant 12 : index
    %c0_113 = arith.constant 0 : index
    %82 = vector.load %arg17[%c12_112, %c0_113] : memref<16x32xf32, #tpu.memory_space<vmem>>, vector<4x32xf32>
    tpu.vector_store %arg17[%c12_112, %c0_113], %81 {strides = array<i32>} : memref<16x32xf32, #tpu.memory_space<vmem>>, vector<4x32xf32>,
    %c4_114 = arith.constant 4 : index
    %c352_115 = arith.constant 352 : index
    %83 = vector.load %arg15[%c4_114, %c352_115] : memref<16x384xf32, #tpu.memory_space<vmem>>, vector<4x32xf32>
    %c12_116 = arith.constant 12 : index
    %c0_117 = arith.constant 0 : index
    %84 = vector.load %arg18[%c12_116, %c0_117] : memref<16x32xf32, #tpu.memory_space<vmem>>, vector<4x32xf32>
    tpu.vector_store %arg18[%c12_116, %c0_117], %83 {strides = array<i32>} : memref<16x32xf32, #tpu.memory_space<vmem>>, vector<4x32xf32>,
    %c0_118 = arith.constant 0 : index
    %c0_119 = arith.constant 0 : index
    %85 = vector.load %arg16[%c0_118, %c0_119] : memref<16x32xf32, #tpu.memory_space<vmem>>, vector<16x32xf32>
    %86 = arith.truncf %85 : vector<16x32xf32> to vector<16x32xbf16>
    %c0_120 = arith.constant 0 : index
    %c0_121 = arith.constant 0 : index
    %87 = vector.load %arg17[%c0_120, %c0_121] : memref<16x32xf32, #tpu.memory_space<vmem>>, vector<16x32xf32>
    %88 = arith.truncf %87 : vector<16x32xf32> to vector<16x32xbf16>
    %c0_122 = arith.constant 0 : index
    %c0_123 = arith.constant 0 : index
    %89 = vector.load %arg18[%c0_122, %c0_123] : memref<16x32xf32, #tpu.memory_space<vmem>>, vector<16x32xf32>
    %90 = arith.truncf %89 : vector<16x32xf32> to vector<16x32xbf16>
    %cst_124 = arith.constant dense<0.000000e+00> : vector<16x16xf32>
    %91 = tpu.matmul %86, %88, %cst_124 {dimension_numbers = #tpu.dot_dimension_numbers<[1], [1], [0], [0], [0, 0, 1, 0], [], []>} : vector<16x32xbf16>, vector<16x32xbf16>, vector<16x16xf32> -> vector<16x16xf32>
    %cst_125 = arith.constant dense<0xFF800000> : vector<16xf32>
    %92 = vector.multi_reduction <maximumf>, %91, %cst_125 [1] : vector<16x16xf32> to vector<16xf32>
    %93 = vector.shape_cast %92 : vector<16xf32> to vector<16x1xf32>
    %94 = vector.broadcast %93 : vector<16x1xf32> to vector<16x16xf32>
    %95 = arith.subf %91, %94 : vector<16x16xf32>
    %96 = math.exp %95 : vector<16x16xf32>
    %cst_126 = arith.constant dense<0.000000e+00> : vector<16xf32>
    %97 = vector.multi_reduction <add>, %96, %cst_126 [1] : vector<16x16xf32> to vector<16xf32>
    %98 = vector.shape_cast %97 : vector<16xf32> to vector<16x1xf32>
    %99 = tpu.reciprocal %98 {approx = true} : vector<16x1xf32> -> vector<16x1xf32>
    %100 = vector.broadcast %99 : vector<16x1xf32> to vector<16x16xf32>
    %101 = arith.mulf %96, %100 : vector<16x16xf32>
    %102 = arith.truncf %101 : vector<16x16xf32> to vector<16x16xbf16>
    %cst_127 = arith.constant dense<0.000000e+00> : vector<16x32xf32>
    %103 = tpu.matmul %102, %90, %cst_127 {dimension_numbers = #tpu.dot_dimension_numbers<[1], [0], [0], [1], [0, 0, 1, 1], [], []>} : vector<16x16xbf16>, vector<16x32xbf16>, vector<16x32xf32> -> vector<16x32xf32>
    %c0_128 = arith.constant 0 : index
    %c0_129 = arith.constant 0 : index
    %104 = vector.load %arg19[%c0_128, %c0_129] : memref<16x32xf32, #tpu.memory_space<vmem>>, vector<16x32xf32>
    tpu.vector_store %arg19[%c0_128, %c0_129], %103 {strides = array<i32>} : memref<16x32xf32, #tpu.memory_space<vmem>>, vector<16x32xf32>,
    %c0_130 = arith.constant 0 : index
    %c0_131 = arith.constant 0 : index
    %105 = vector.load %arg19[%c0_130, %c0_131] : memref<16x32xf32, #tpu.memory_space<vmem>>, vector<4x32xf32>
    %c4_132 = arith.constant 4 : index
    %c0_133 = arith.constant 0 : index
    %106 = vector.load %arg20[%c4_132, %c0_133] : memref<16x128xf32, #tpu.memory_space<vmem>>, vector<4x32xf32>
    tpu.vector_store %arg20[%c4_132, %c0_133], %105 {strides = array<i32>} : memref<16x128xf32, #tpu.memory_space<vmem>>, vector<4x32xf32>,
    %c4_134 = arith.constant 4 : index
    %c0_135 = arith.constant 0 : index
    %107 = vector.load %arg19[%c4_134, %c0_135] : memref<16x32xf32, #tpu.memory_space<vmem>>, vector<4x32xf32>
    %c4_136 = arith.constant 4 : index
    %c32_137 = arith.constant 32 : index
    %108 = vector.load %arg20[%c4_136, %c32_137] : memref<16x128xf32, #tpu.memory_space<vmem>>, vector<4x32xf32>
    tpu.vector_store %arg20[%c4_136, %c32_137], %107 {strides = array<i32>} : memref<16x128xf32, #tpu.memory_space<vmem>>, vector<4x32xf32>,
    %c8_138 = arith.constant 8 : index
    %c0_139 = arith.constant 0 : index
    %109 = vector.load %arg19[%c8_138, %c0_139] : memref<16x32xf32, #tpu.memory_space<vmem>>, vector<4x32xf32>
    %c4_140 = arith.constant 4 : index
    %c64_141 = arith.constant 64 : index
    %110 = vector.load %arg20[%c4_140, %c64_141] : memref<16x128xf32, #tpu.memory_space<vmem>>, vector<4x32xf32>
    tpu.vector_store %arg20[%c4_140, %c64_141], %109 {strides = array<i32>} : memref<16x128xf32, #tpu.memory_space<vmem>>, vector<4x32xf32>,
    %c12_142 = arith.constant 12 : index
    %c0_143 = arith.constant 0 : index
    %111 = vector.load %arg19[%c12_142, %c0_143] : memref<16x32xf32, #tpu.memory_space<vmem>>, vector<4x32xf32>
    %c4_144 = arith.constant 4 : index
    %c96_145 = arith.constant 96 : index
    %112 = vector.load %arg20[%c4_144, %c96_145] : memref<16x128xf32, #tpu.memory_space<vmem>>, vector<4x32xf32>
    tpu.vector_store %arg20[%c4_144, %c96_145], %111 {strides = array<i32>} : memref<16x128xf32, #tpu.memory_space<vmem>>, vector<4x32xf32>,
    %c8_146 = arith.constant 8 : index
    %c0_147 = arith.constant 0 : index
    %113 = vector.load %arg15[%c8_146, %c0_147] : memref<16x384xf32, #tpu.memory_space<vmem>>, vector<4x32xf32>
    %c0_148 = arith.constant 0 : index
    %c0_149 = arith.constant 0 : index
    %114 = vector.load %arg16[%c0_148, %c0_149] : memref<16x32xf32, #tpu.memory_space<vmem>>, vector<4x32xf32>
    tpu.vector_store %arg16[%c0_148, %c0_149], %113 {strides = array<i32>} : memref<16x32xf32, #tpu.memory_space<vmem>>, vector<4x32xf32>,
    %c8_150 = arith.constant 8 : index
    %c128_151 = arith.constant 128 : index
    %115 = vector.load %arg15[%c8_150, %c128_151] : memref<16x384xf32, #tpu.memory_space<vmem>>, vector<4x32xf32>
    %c0_152 = arith.constant 0 : index
    %c0_153 = arith.constant 0 : index
    %116 = vector.load %arg17[%c0_152, %c0_153] : memref<16x32xf32, #tpu.memory_space<vmem>>, vector<4x32xf32>
    tpu.vector_store %arg17[%c0_152, %c0_153], %115 {strides = array<i32>} : memref<16x32xf32, #tpu.memory_space<vmem>>, vector<4x32xf32>,
    %c8_154 = arith.constant 8 : index
    %c256_155 = arith.constant 256 : index
    %117 = vector.load %arg15[%c8_154, %c256_155] : memref<16x384xf32, #tpu.memory_space<vmem>>, vector<4x32xf32>
    %c0_156 = arith.constant 0 : index
    %c0_157 = arith.constant 0 : index
    %118 = vector.load %arg18[%c0_156, %c0_157] : memref<16x32xf32, #tpu.memory_space<vmem>>, vector<4x32xf32>
    tpu.vector_store %arg18[%c0_156, %c0_157], %117 {strides = array<i32>} : memref<16x32xf32, #tpu.memory_space<vmem>>, vector<4x32xf32>,
    %c8_158 = arith.constant 8 : index
    %c32_159 = arith.constant 32 : index
    %119 = vector.load %arg15[%c8_158, %c32_159] : memref<16x384xf32, #tpu.memory_space<vmem>>, vector<4x32xf32>
    %c4_160 = arith.constant 4 : index
    %c0_161 = arith.constant 0 : index
    %120 = vector.load %arg16[%c4_160, %c0_161] : memref<16x32xf32, #tpu.memory_space<vmem>>, vector<4x32xf32>
    tpu.vector_store %arg16[%c4_160, %c0_161], %119 {strides = array<i32>} : memref<16x32xf32, #tpu.memory_space<vmem>>, vector<4x32xf32>,
    %c8_162 = arith.constant 8 : index
    %c160_163 = arith.constant 160 : index
    %121 = vector.load %arg15[%c8_162, %c160_163] : memref<16x384xf32, #tpu.memory_space<vmem>>, vector<4x32xf32>
    %c4_164 = arith.constant 4 : index
    %c0_165 = arith.constant 0 : index
    %122 = vector.load %arg17[%c4_164, %c0_165] : memref<16x32xf32, #tpu.memory_space<vmem>>, vector<4x32xf32>
    tpu.vector_store %arg17[%c4_164, %c0_165], %121 {strides = array<i32>} : memref<16x32xf32, #tpu.memory_space<vmem>>, vector<4x32xf32>,
    %c8_166 = arith.constant 8 : index
    %c288_167 = arith.constant 288 : index
    %123 = vector.load %arg15[%c8_166, %c288_167] : memref<16x384xf32, #tpu.memory_space<vmem>>, vector<4x32xf32>
    %c4_168 = arith.constant 4 : index
    %c0_169 = arith.constant 0 : index
    %124 = vector.load %arg18[%c4_168, %c0_169] : memref<16x32xf32, #tpu.memory_space<vmem>>, vector<4x32xf32>
    tpu.vector_store %arg18[%c4_168, %c0_169], %123 {strides = array<i32>} : memref<16x32xf32, #tpu.memory_space<vmem>>, vector<4x32xf32>,
    %c8_170 = arith.constant 8 : index
    %c64_171 = arith.constant 64 : index
    %125 = vector.load %arg15[%c8_170, %c64_171] : memref<16x384xf32, #tpu.memory_space<vmem>>, vector<4x32xf32>
    %c8_172 = arith.constant 8 : index
    %c0_173 = arith.constant 0 : index
    %126 = vector.load %arg16[%c8_172, %c0_173] : memref<16x32xf32, #tpu.memory_space<vmem>>, vector<4x32xf32>
    tpu.vector_store %arg16[%c8_172, %c0_173], %125 {strides = array<i32>} : memref<16x32xf32, #tpu.memory_space<vmem>>, vector<4x32xf32>,
    %c8_174 = arith.constant 8 : index
    %c192_175 = arith.constant 192 : index
    %127 = vector.load %arg15[%c8_174, %c192_175] : memref<16x384xf32, #tpu.memory_space<vmem>>, vector<4x32xf32>
    %c8_176 = arith.constant 8 : index
    %c0_177 = arith.constant 0 : index
    %128 = vector.load %arg17[%c8_176, %c0_177] : memref<16x32xf32, #tpu.memory_space<vmem>>, vector<4x32xf32>
    tpu.vector_store %arg17[%c8_176, %c0_177], %127 {strides = array<i32>} : memref<16x32xf32, #tpu.memory_space<vmem>>, vector<4x32xf32>,
    %c8_178 = arith.constant 8 : index
    %c320_179 = arith.constant 320 : index
    %129 = vector.load %arg15[%c8_178, %c320_179] : memref<16x384xf32, #tpu.memory_space<vmem>>, vector<4x32xf32>
    %c8_180 = arith.constant 8 : index
    %c0_181 = arith.constant 0 : index
    %130 = vector.load %arg18[%c8_180, %c0_181] : memref<16x32xf32, #tpu.memory_space<vmem>>, vector<4x32xf32>
    tpu.vector_store %arg18[%c8_180, %c0_181], %129 {strides = array<i32>} : memref<16x32xf32, #tpu.memory_space<vmem>>, vector<4x32xf32>,
    %c8_182 = arith.constant 8 : index
    %c96_183 = arith.constant 96 : index
    %131 = vector.load %arg15[%c8_182, %c96_183] : memref<16x384xf32, #tpu.memory_space<vmem>>, vector<4x32xf32>
    %c12_184 = arith.constant 12 : index
    %c0_185 = arith.constant 0 : index
    %132 = vector.load %arg16[%c12_184, %c0_185] : memref<16x32xf32, #tpu.memory_space<vmem>>, vector<4x32xf32>
    tpu.vector_store %arg16[%c12_184, %c0_185], %131 {strides = array<i32>} : memref<16x32xf32, #tpu.memory_space<vmem>>, vector<4x32xf32>,
    %c8_186 = arith.constant 8 : index
    %c224_187 = arith.constant 224 : index
    %133 = vector.load %arg15[%c8_186, %c224_187] : memref<16x384xf32, #tpu.memory_space<vmem>>, vector<4x32xf32>
    %c12_188 = arith.constant 12 : index
    %c0_189 = arith.constant 0 : index
    %134 = vector.load %arg17[%c12_188, %c0_189] : memref<16x32xf32, #tpu.memory_space<vmem>>, vector<4x32xf32>
    tpu.vector_store %arg17[%c12_188, %c0_189], %133 {strides = array<i32>} : memref<16x32xf32, #tpu.memory_space<vmem>>, vector<4x32xf32>,
    %c8_190 = arith.constant 8 : index
    %c352_191 = arith.constant 352 : index
    %135 = vector.load %arg15[%c8_190, %c352_191] : memref<16x384xf32, #tpu.memory_space<vmem>>, vector<4x32xf32>
    %c12_192 = arith.constant 12 : index
    %c0_193 = arith.constant 0 : index
    %136 = vector.load %arg18[%c12_192, %c0_193] : memref<16x32xf32, #tpu.memory_space<vmem>>, vector<4x32xf32>
    tpu.vector_store %arg18[%c12_192, %c0_193], %135 {strides = array<i32>} : memref<16x32xf32, #tpu.memory_space<vmem>>, vector<4x32xf32>,
    %c0_194 = arith.constant 0 : index
    %c0_195 = arith.constant 0 : index
    %137 = vector.load %arg16[%c0_194, %c0_195] : memref<16x32xf32, #tpu.memory_space<vmem>>, vector<16x32xf32>
    %138 = arith.truncf %137 : vector<16x32xf32> to vector<16x32xbf16>
    %c0_196 = arith.constant 0 : index
    %c0_197 = arith.constant 0 : index
    %139 = vector.load %arg17[%c0_196, %c0_197] : memref<16x32xf32, #tpu.memory_space<vmem>>, vector<16x32xf32>
    %140 = arith.truncf %139 : vector<16x32xf32> to vector<16x32xbf16>
    %c0_198 = arith.constant 0 : index
    %c0_199 = arith.constant 0 : index
    %141 = vector.load %arg18[%c0_198, %c0_199] : memref<16x32xf32, #tpu.memory_space<vmem>>, vector<16x32xf32>
    %142 = arith.truncf %141 : vector<16x32xf32> to vector<16x32xbf16>
    %cst_200 = arith.constant dense<0.000000e+00> : vector<16x16xf32>
    %143 = tpu.matmul %138, %140, %cst_200 {dimension_numbers = #tpu.dot_dimension_numbers<[1], [1], [0], [0], [0, 0, 1, 0], [], []>} : vector<16x32xbf16>, vector<16x32xbf16>, vector<16x16xf32> -> vector<16x16xf32>
    %cst_201 = arith.constant dense<0xFF800000> : vector<16xf32>
    %144 = vector.multi_reduction <maximumf>, %143, %cst_201 [1] : vector<16x16xf32> to vector<16xf32>
    %145 = vector.shape_cast %144 : vector<16xf32> to vector<16x1xf32>
    %146 = vector.broadcast %145 : vector<16x1xf32> to vector<16x16xf32>
    %147 = arith.subf %143, %146 : vector<16x16xf32>
    %148 = math.exp %147 : vector<16x16xf32>
    %cst_202 = arith.constant dense<0.000000e+00> : vector<16xf32>
    %149 = vector.multi_reduction <add>, %148, %cst_202 [1] : vector<16x16xf32> to vector<16xf32>
    %150 = vector.shape_cast %149 : vector<16xf32> to vector<16x1xf32>
    %151 = tpu.reciprocal %150 {approx = true} : vector<16x1xf32> -> vector<16x1xf32>
    %152 = vector.broadcast %151 : vector<16x1xf32> to vector<16x16xf32>
    %153 = arith.mulf %148, %152 : vector<16x16xf32>
    %154 = arith.truncf %153 : vector<16x16xf32> to vector<16x16xbf16>
    %cst_203 = arith.constant dense<0.000000e+00> : vector<16x32xf32>
    %155 = tpu.matmul %154, %142, %cst_203 {dimension_numbers = #tpu.dot_dimension_numbers<[1], [0], [0], [1], [0, 0, 1, 1], [], []>} : vector<16x16xbf16>, vector<16x32xbf16>, vector<16x32xf32> -> vector<16x32xf32>
    %c0_204 = arith.constant 0 : index
    %c0_205 = arith.constant 0 : index
    %156 = vector.load %arg19[%c0_204, %c0_205] : memref<16x32xf32, #tpu.memory_space<vmem>>, vector<16x32xf32>
    tpu.vector_store %arg19[%c0_204, %c0_205], %155 {strides = array<i32>} : memref<16x32xf32, #tpu.memory_space<vmem>>, vector<16x32xf32>,
    %c0_206 = arith.constant 0 : index
    %c0_207 = arith.constant 0 : index
    %157 = vector.load %arg19[%c0_206, %c0_207] : memref<16x32xf32, #tpu.memory_space<vmem>>, vector<4x32xf32>
    %c8_208 = arith.constant 8 : index
    %c0_209 = arith.constant 0 : index
    %158 = vector.load %arg20[%c8_208, %c0_209] : memref<16x128xf32, #tpu.memory_space<vmem>>, vector<4x32xf32>
    tpu.vector_store %arg20[%c8_208, %c0_209], %157 {strides = array<i32>} : memref<16x128xf32, #tpu.memory_space<vmem>>, vector<4x32xf32>,
    %c4_210 = arith.constant 4 : index
    %c0_211 = arith.constant 0 : index
    %159 = vector.load %arg19[%c4_210, %c0_211] : memref<16x32xf32, #tpu.memory_space<vmem>>, vector<4x32xf32>
    %c8_212 = arith.constant 8 : index
    %c32_213 = arith.constant 32 : index
    %160 = vector.load %arg20[%c8_212, %c32_213] : memref<16x128xf32, #tpu.memory_space<vmem>>, vector<4x32xf32>
    tpu.vector_store %arg20[%c8_212, %c32_213], %159 {strides = array<i32>} : memref<16x128xf32, #tpu.memory_space<vmem>>, vector<4x32xf32>,
    %c8_214 = arith.constant 8 : index
    %c0_215 = arith.constant 0 : index
    %161 = vector.load %arg19[%c8_214, %c0_215] : memref<16x32xf32, #tpu.memory_space<vmem>>, vector<4x32xf32>
    %c8_216 = arith.constant 8 : index
    %c64_217 = arith.constant 64 : index
    %162 = vector.load %arg20[%c8_216, %c64_217] : memref<16x128xf32, #tpu.memory_space<vmem>>, vector<4x32xf32>
    tpu.vector_store %arg20[%c8_216, %c64_217], %161 {strides = array<i32>} : memref<16x128xf32, #tpu.memory_space<vmem>>, vector<4x32xf32>,
    %c12_218 = arith.constant 12 : index
    %c0_219 = arith.constant 0 : index
    %163 = vector.load %arg19[%c12_218, %c0_219] : memref<16x32xf32, #tpu.memory_space<vmem>>, vector<4x32xf32>
    %c8_220 = arith.constant 8 : index
    %c96_221 = arith.constant 96 : index
    %164 = vector.load %arg20[%c8_220, %c96_221] : memref<16x128xf32, #tpu.memory_space<vmem>>, vector<4x32xf32>
    tpu.vector_store %arg20[%c8_220, %c96_221], %163 {strides = array<i32>} : memref<16x128xf32, #tpu.memory_space<vmem>>, vector<4x32xf32>,
    %c12_222 = arith.constant 12 : index
    %c0_223 = arith.constant 0 : index
    %165 = vector.load %arg15[%c12_222, %c0_223] : memref<16x384xf32, #tpu.memory_space<vmem>>, vector<4x32xf32>
    %c0_224 = arith.constant 0 : index
    %c0_225 = arith.constant 0 : index
    %166 = vector.load %arg16[%c0_224, %c0_225] : memref<16x32xf32, #tpu.memory_space<vmem>>, vector<4x32xf32>
    tpu.vector_store %arg16[%c0_224, %c0_225], %165 {strides = array<i32>} : memref<16x32xf32, #tpu.memory_space<vmem>>, vector<4x32xf32>,
    %c12_226 = arith.constant 12 : index
    %c128_227 = arith.constant 128 : index
    %167 = vector.load %arg15[%c12_226, %c128_227] : memref<16x384xf32, #tpu.memory_space<vmem>>, vector<4x32xf32>
    %c0_228 = arith.constant 0 : index
    %c0_229 = arith.constant 0 : index
    %168 = vector.load %arg17[%c0_228, %c0_229] : memref<16x32xf32, #tpu.memory_space<vmem>>, vector<4x32xf32>
    tpu.vector_store %arg17[%c0_228, %c0_229], %167 {strides = array<i32>} : memref<16x32xf32, #tpu.memory_space<vmem>>, vector<4x32xf32>,
    %c12_230 = arith.constant 12 : index
    %c256_231 = arith.constant 256 : index
    %169 = vector.load %arg15[%c12_230, %c256_231] : memref<16x384xf32, #tpu.memory_space<vmem>>, vector<4x32xf32>
    %c0_232 = arith.constant 0 : index
    %c0_233 = arith.constant 0 : index
    %170 = vector.load %arg18[%c0_232, %c0_233] : memref<16x32xf32, #tpu.memory_space<vmem>>, vector<4x32xf32>
    tpu.vector_store %arg18[%c0_232, %c0_233], %169 {strides = array<i32>} : memref<16x32xf32, #tpu.memory_space<vmem>>, vector<4x32xf32>,
    %c12_234 = arith.constant 12 : index
    %c32_235 = arith.constant 32 : index
    %171 = vector.load %arg15[%c12_234, %c32_235] : memref<16x384xf32, #tpu.memory_space<vmem>>, vector<4x32xf32>
    %c4_236 = arith.constant 4 : index
    %c0_237 = arith.constant 0 : index
    %172 = vector.load %arg16[%c4_236, %c0_237] : memref<16x32xf32, #tpu.memory_space<vmem>>, vector<4x32xf32>
    tpu.vector_store %arg16[%c4_236, %c0_237], %171 {strides = array<i32>} : memref<16x32xf32, #tpu.memory_space<vmem>>, vector<4x32xf32>,
    %c12_238 = arith.constant 12 : index
    %c160_239 = arith.constant 160 : index
    %173 = vector.load %arg15[%c12_238, %c160_239] : memref<16x384xf32, #tpu.memory_space<vmem>>, vector<4x32xf32>
    %c4_240 = arith.constant 4 : index
    %c0_241 = arith.constant 0 : index
    %174 = vector.load %arg17[%c4_240, %c0_241] : memref<16x32xf32, #tpu.memory_space<vmem>>, vector<4x32xf32>
    tpu.vector_store %arg17[%c4_240, %c0_241], %173 {strides = array<i32>} : memref<16x32xf32, #tpu.memory_space<vmem>>, vector<4x32xf32>,
    %c12_242 = arith.constant 12 : index
    %c288_243 = arith.constant 288 : index
    %175 = vector.load %arg15[%c12_242, %c288_243] : memref<16x384xf32, #tpu.memory_space<vmem>>, vector<4x32xf32>
    %c4_244 = arith.constant 4 : index
    %c0_245 = arith.constant 0 : index
    %176 = vector.load %arg18[%c4_244, %c0_245] : memref<16x32xf32, #tpu.memory_space<vmem>>, vector<4x32xf32>
    tpu.vector_store %arg18[%c4_244, %c0_245], %175 {strides = array<i32>} : memref<16x32xf32, #tpu.memory_space<vmem>>, vector<4x32xf32>,
    %c12_246 = arith.constant 12 : index
    %c64_247 = arith.constant 64 : index
    %177 = vector.load %arg15[%c12_246, %c64_247] : memref<16x384xf32, #tpu.memory_space<vmem>>, vector<4x32xf32>
    %c8_248 = arith.constant 8 : index
    %c0_249 = arith.constant 0 : index
    %178 = vector.load %arg16[%c8_248, %c0_249] : memref<16x32xf32, #tpu.memory_space<vmem>>, vector<4x32xf32>
    tpu.vector_store %arg16[%c8_248, %c0_249], %177 {strides = array<i32>} : memref<16x32xf32, #tpu.memory_space<vmem>>, vector<4x32xf32>,
    %c12_250 = arith.constant 12 : index
    %c192_251 = arith.constant 192 : index
    %179 = vector.load %arg15[%c12_250, %c192_251] : memref<16x384xf32, #tpu.memory_space<vmem>>, vector<4x32xf32>
    %c8_252 = arith.constant 8 : index
    %c0_253 = arith.constant 0 : index
    %180 = vector.load %arg17[%c8_252, %c0_253] : memref<16x32xf32, #tpu.memory_space<vmem>>, vector<4x32xf32>
    tpu.vector_store %arg17[%c8_252, %c0_253], %179 {strides = array<i32>} : memref<16x32xf32, #tpu.memory_space<vmem>>, vector<4x32xf32>,
    %c12_254 = arith.constant 12 : index
    %c320_255 = arith.constant 320 : index
    %181 = vector.load %arg15[%c12_254, %c320_255] : memref<16x384xf32, #tpu.memory_space<vmem>>, vector<4x32xf32>
    %c8_256 = arith.constant 8 : index
    %c0_257 = arith.constant 0 : index
    %182 = vector.load %arg18[%c8_256, %c0_257] : memref<16x32xf32, #tpu.memory_space<vmem>>, vector<4x32xf32>
    tpu.vector_store %arg18[%c8_256, %c0_257], %181 {strides = array<i32>} : memref<16x32xf32, #tpu.memory_space<vmem>>, vector<4x32xf32>,
    %c12_258 = arith.constant 12 : index
    %c96_259 = arith.constant 96 : index
    %183 = vector.load %arg15[%c12_258, %c96_259] : memref<16x384xf32, #tpu.memory_space<vmem>>, vector<4x32xf32>
    %c12_260 = arith.constant 12 : index
    %c0_261 = arith.constant 0 : index
    %184 = vector.load %arg16[%c12_260, %c0_261] : memref<16x32xf32, #tpu.memory_space<vmem>>, vector<4x32xf32>
    tpu.vector_store %arg16[%c12_260, %c0_261], %183 {strides = array<i32>} : memref<16x32xf32, #tpu.memory_space<vmem>>, vector<4x32xf32>,
    %c12_262 = arith.constant 12 : index
    %c224_263 = arith.constant 224 : index
    %185 = vector.load %arg15[%c12_262, %c224_263] : memref<16x384xf32, #tpu.memory_space<vmem>>, vector<4x32xf32>
    %c12_264 = arith.constant 12 : index
    %c0_265 = arith.constant 0 : index
    %186 = vector.load %arg17[%c12_264, %c0_265] : memref<16x32xf32, #tpu.memory_space<vmem>>, vector<4x32xf32>
    tpu.vector_store %arg17[%c12_264, %c0_265], %185 {strides = array<i32>} : memref<16x32xf32, #tpu.memory_space<vmem>>, vector<4x32xf32>,
    %c12_266 = arith.constant 12 : index
    %c352_267 = arith.constant 352 : index
    %187 = vector.load %arg15[%c12_266, %c352_267] : memref<16x384xf32, #tpu.memory_space<vmem>>, vector<4x32xf32>
    %c12_268 = arith.constant 12 : index
    %c0_269 = arith.constant 0 : index
    %188 = vector.load %arg18[%c12_268, %c0_269] : memref<16x32xf32, #tpu.memory_space<vmem>>, vector<4x32xf32>
    tpu.vector_store %arg18[%c12_268, %c0_269], %187 {strides = array<i32>} : memref<16x32xf32, #tpu.memory_space<vmem>>, vector<4x32xf32>,
    %c0_270 = arith.constant 0 : index
    %c0_271 = arith.constant 0 : index
    %189 = vector.load %arg16[%c0_270, %c0_271] : memref<16x32xf32, #tpu.memory_space<vmem>>, vector<16x32xf32>
    %190 = arith.truncf %189 : vector<16x32xf32> to vector<16x32xbf16>
    %c0_272 = arith.constant 0 : index
    %c0_273 = arith.constant 0 : index
    %191 = vector.load %arg17[%c0_272, %c0_273] : memref<16x32xf32, #tpu.memory_space<vmem>>, vector<16x32xf32>
    %192 = arith.truncf %191 : vector<16x32xf32> to vector<16x32xbf16>
    %c0_274 = arith.constant 0 : index
    %c0_275 = arith.constant 0 : index
    %193 = vector.load %arg18[%c0_274, %c0_275] : memref<16x32xf32, #tpu.memory_space<vmem>>, vector<16x32xf32>
    %194 = arith.truncf %193 : vector<16x32xf32> to vector<16x32xbf16>
    %cst_276 = arith.constant dense<0.000000e+00> : vector<16x16xf32>
    %195 = tpu.matmul %190, %192, %cst_276 {dimension_numbers = #tpu.dot_dimension_numbers<[1], [1], [0], [0], [0, 0, 1, 0], [], []>} : vector<16x32xbf16>, vector<16x32xbf16>, vector<16x16xf32> -> vector<16x16xf32>
    %cst_277 = arith.constant dense<0xFF800000> : vector<16xf32>
    %196 = vector.multi_reduction <maximumf>, %195, %cst_277 [1] : vector<16x16xf32> to vector<16xf32>
    %197 = vector.shape_cast %196 : vector<16xf32> to vector<16x1xf32>
    %198 = vector.broadcast %197 : vector<16x1xf32> to vector<16x16xf32>
    %199 = arith.subf %195, %198 : vector<16x16xf32>
    %200 = math.exp %199 : vector<16x16xf32>
    %cst_278 = arith.constant dense<0.000000e+00> : vector<16xf32>
    %201 = vector.multi_reduction <add>, %200, %cst_278 [1] : vector<16x16xf32> to vector<16xf32>
    %202 = vector.shape_cast %201 : vector<16xf32> to vector<16x1xf32>
    %203 = tpu.reciprocal %202 {approx = true} : vector<16x1xf32> -> vector<16x1xf32>
    %204 = vector.broadcast %203 : vector<16x1xf32> to vector<16x16xf32>
    %205 = arith.mulf %200, %204 : vector<16x16xf32>
    %206 = arith.truncf %205 : vector<16x16xf32> to vector<16x16xbf16>
    %cst_279 = arith.constant dense<0.000000e+00> : vector<16x32xf32>
    %207 = tpu.matmul %206, %194, %cst_279 {dimension_numbers = #tpu.dot_dimension_numbers<[1], [0], [0], [1], [0, 0, 1, 1], [], []>} : vector<16x16xbf16>, vector<16x32xbf16>, vector<16x32xf32> -> vector<16x32xf32>
    %c0_280 = arith.constant 0 : index
    %c0_281 = arith.constant 0 : index
    %208 = vector.load %arg19[%c0_280, %c0_281] : memref<16x32xf32, #tpu.memory_space<vmem>>, vector<16x32xf32>
    tpu.vector_store %arg19[%c0_280, %c0_281], %207 {strides = array<i32>} : memref<16x32xf32, #tpu.memory_space<vmem>>, vector<16x32xf32>,
    %c0_282 = arith.constant 0 : index
    %c0_283 = arith.constant 0 : index
    %209 = vector.load %arg19[%c0_282, %c0_283] : memref<16x32xf32, #tpu.memory_space<vmem>>, vector<4x32xf32>
    %c12_284 = arith.constant 12 : index
    %c0_285 = arith.constant 0 : index
    %210 = vector.load %arg20[%c12_284, %c0_285] : memref<16x128xf32, #tpu.memory_space<vmem>>, vector<4x32xf32>
    tpu.vector_store %arg20[%c12_284, %c0_285], %209 {strides = array<i32>} : memref<16x128xf32, #tpu.memory_space<vmem>>, vector<4x32xf32>,
    %c4_286 = arith.constant 4 : index
    %c0_287 = arith.constant 0 : index
    %211 = vector.load %arg19[%c4_286, %c0_287] : memref<16x32xf32, #tpu.memory_space<vmem>>, vector<4x32xf32>
    %c12_288 = arith.constant 12 : index
    %c32_289 = arith.constant 32 : index
    %212 = vector.load %arg20[%c12_288, %c32_289] : memref<16x128xf32, #tpu.memory_space<vmem>>, vector<4x32xf32>
    tpu.vector_store %arg20[%c12_288, %c32_289], %211 {strides = array<i32>} : memref<16x128xf32, #tpu.memory_space<vmem>>, vector<4x32xf32>,
    %c8_290 = arith.constant 8 : index
    %c0_291 = arith.constant 0 : index
    %213 = vector.load %arg19[%c8_290, %c0_291] : memref<16x32xf32, #tpu.memory_space<vmem>>, vector<4x32xf32>
    %c12_292 = arith.constant 12 : index
    %c64_293 = arith.constant 64 : index
    %214 = vector.load %arg20[%c12_292, %c64_293] : memref<16x128xf32, #tpu.memory_space<vmem>>, vector<4x32xf32>
    tpu.vector_store %arg20[%c12_292, %c64_293], %213 {strides = array<i32>} : memref<16x128xf32, #tpu.memory_space<vmem>>, vector<4x32xf32>,
    %c12_294 = arith.constant 12 : index
    %c0_295 = arith.constant 0 : index
    %215 = vector.load %arg19[%c12_294, %c0_295] : memref<16x32xf32, #tpu.memory_space<vmem>>, vector<4x32xf32>
    %c12_296 = arith.constant 12 : index
    %c96_297 = arith.constant 96 : index
    %216 = vector.load %arg20[%c12_296, %c96_297] : memref<16x128xf32, #tpu.memory_space<vmem>>, vector<4x32xf32>
    tpu.vector_store %arg20[%c12_296, %c96_297], %215 {strides = array<i32>} : memref<16x128xf32, #tpu.memory_space<vmem>>, vector<4x32xf32>,
    %c0_298 = arith.constant 0 : index
    %c0_299 = arith.constant 0 : index
    %217 = vector.load %arg20[%c0_298, %c0_299] : memref<16x128xf32, #tpu.memory_space<vmem>>, vector<16x128xf32>
    %218 = arith.truncf %217 : vector<16x128xf32> to vector<16x128xbf16>
    %c0_300 = arith.constant 0 : index
    %c0_301 = arith.constant 0 : index
    %219 = vector.load %arg4[%c0_300, %c0_301] : memref<128x128xbf16, #tpu.memory_space<vmem>>, vector<128x128xbf16>
    %cst_302 = arith.constant dense<0.000000e+00> : vector<16x128xf32>
    %220 = tpu.matmul %218, %219, %cst_302 {dimension_numbers = #tpu.dot_dimension_numbers<[1], [0], [0], [1], [0, 0, 1, 1], [], []>} : vector<16x128xbf16>, vector<128x128xbf16>, vector<16x128xf32> -> vector<16x128xf32>
    %c0_303 = arith.constant 0 : index
    %c0_304 = arith.constant 0 : index
    %221 = vector.load %arg5[%c0_303, %c0_304] : memref<1x128xf32, #tpu.memory_space<vmem>>, vector<1x128xf32>
    %222 = vector.broadcast %221 : vector<1x128xf32> to vector<16x128xf32>
    %223 = arith.addf %220, %222 : vector<16x128xf32>
    %224 = arith.addf %223, %1 : vector<16x128xf32>
    %c0_305 = arith.constant 0 : index
    %c0_306 = arith.constant 0 : index
    %225 = vector.load %arg6[%c0_305, %c0_306] : memref<1x128xf32, #tpu.memory_space<vmem>>, vector<1x128xf32>
    %c0_307 = arith.constant 0 : index
    %c0_308 = arith.constant 0 : index
    %226 = vector.load %arg7[%c0_307, %c0_308] : memref<1x128xf32, #tpu.memory_space<vmem>>, vector<1x128xf32>
    %cst_309 = arith.constant dense<0.000000e+00> : vector<16xf32>
    %227 = vector.multi_reduction <add>, %224, %cst_309 [1] : vector<16x128xf32> to vector<16xf32>
    %228 = vector.shape_cast %227 : vector<16xf32> to vector<16x1xf32>
    %cst_310 = arith.constant 1.280000e+02 : f32
    %229 = vector.broadcast %cst_310 : f32 to vector<16x1xf32>
    %230 = arith.divf %228, %229 : vector<16x1xf32>
    %231 = vector.broadcast %230 : vector<16x1xf32> to vector<16x128xf32>
    %232 = arith.subf %224, %231 : vector<16x128xf32>
    %233 = arith.mulf %232, %232 : vector<16x128xf32>
    %cst_311 = arith.constant dense<0.000000e+00> : vector<16xf32>
    %234 = vector.multi_reduction <add>, %233, %cst_311 [1] : vector<16x128xf32> to vector<16xf32>
    %235 = vector.shape_cast %234 : vector<16xf32> to vector<16x1xf32>
    %cst_312 = arith.constant 1.280000e+02 : f32
    %236 = vector.broadcast %cst_312 : f32 to vector<16x1xf32>
    %237 = arith.divf %235, %236 : vector<16x1xf32>
    %cst_313 = arith.constant 9.99999974E-6 : f32
    %238 = vector.broadcast %cst_313 : f32 to vector<16x1xf32>
    %239 = arith.addf %237, %238 : vector<16x1xf32>
    %240 = math.rsqrt %239 : vector<16x1xf32>
    %241 = vector.broadcast %240 : vector<16x1xf32> to vector<16x128xf32>
    %242 = arith.mulf %232, %241 : vector<16x128xf32>
    %243 = vector.broadcast %225 : vector<1x128xf32> to vector<16x128xf32>
    %244 = arith.mulf %242, %243 : vector<16x128xf32>
    %245 = vector.broadcast %226 : vector<1x128xf32> to vector<16x128xf32>
    %246 = arith.addf %244, %245 : vector<16x128xf32>
    %247 = arith.truncf %246 : vector<16x128xf32> to vector<16x128xbf16>
    %c0_314 = arith.constant 0 : index
    %c0_315 = arith.constant 0 : index
    %248 = vector.load %arg8[%c0_314, %c0_315] : memref<128x256xbf16, #tpu.memory_space<vmem>>, vector<128x256xbf16>
    %cst_316 = arith.constant dense<0.000000e+00> : vector<16x256xf32>
    %249 = tpu.matmul %247, %248, %cst_316 {dimension_numbers = #tpu.dot_dimension_numbers<[1], [0], [0], [1], [0, 0, 1, 1], [], []>} : vector<16x128xbf16>, vector<128x256xbf16>, vector<16x256xf32> -> vector<16x256xf32>
    %c0_317 = arith.constant 0 : index
    %c0_318 = arith.constant 0 : index
    %250 = vector.load %arg9[%c0_317, %c0_318] : memref<1x256xf32, #tpu.memory_space<vmem>>, vector<1x256xf32>
    %251 = vector.broadcast %250 : vector<1x256xf32> to vector<16x256xf32>
    %252 = arith.addf %249, %251 : vector<16x256xf32>
    %cst_319 = arith.constant 0.000000e+00 : f32
    %253 = vector.broadcast %cst_319 : f32 to vector<16x256xf32>
    %254 = arith.maximumf %252, %253 : vector<16x256xf32>
    %255 = arith.truncf %254 : vector<16x256xf32> to vector<16x256xbf16>
    %c0_320 = arith.constant 0 : index
    %c0_321 = arith.constant 0 : index
    %256 = vector.load %arg10[%c0_320, %c0_321] : memref<256x128xbf16, #tpu.memory_space<vmem>>, vector<256x128xbf16>
    %cst_322 = arith.constant dense<0.000000e+00> : vector<16x128xf32>
    %257 = tpu.matmul %255, %256, %cst_322 {dimension_numbers = #tpu.dot_dimension_numbers<[1], [0], [0], [1], [0, 0, 1, 1], [], []>} : vector<16x256xbf16>, vector<256x128xbf16>, vector<16x128xf32> -> vector<16x128xf32>
    %c0_323 = arith.constant 0 : index
    %c0_324 = arith.constant 0 : index
    %258 = vector.load %arg11[%c0_323, %c0_324] : memref<1x128xf32, #tpu.memory_space<vmem>>, vector<1x128xf32>
    %259 = vector.broadcast %258 : vector<1x128xf32> to vector<16x128xf32>
    %260 = arith.addf %257, %259 : vector<16x128xf32>
    %261 = arith.addf %260, %246 : vector<16x128xf32>
    %c0_325 = arith.constant 0 : index
    %c0_326 = arith.constant 0 : index
    %262 = vector.load %arg12[%c0_325, %c0_326] : memref<1x128xf32, #tpu.memory_space<vmem>>, vector<1x128xf32>
    %c0_327 = arith.constant 0 : index
    %c0_328 = arith.constant 0 : index
    %263 = vector.load %arg13[%c0_327, %c0_328] : memref<1x128xf32, #tpu.memory_space<vmem>>, vector<1x128xf32>
    %cst_329 = arith.constant dense<0.000000e+00> : vector<16xf32>
    %264 = vector.multi_reduction <add>, %261, %cst_329 [1] : vector<16x128xf32> to vector<16xf32>
    %265 = vector.shape_cast %264 : vector<16xf32> to vector<16x1xf32>
    %cst_330 = arith.constant 1.280000e+02 : f32
    %266 = vector.broadcast %cst_330 : f32 to vector<16x1xf32>
    %267 = arith.divf %265, %266 : vector<16x1xf32>
    %268 = vector.broadcast %267 : vector<16x1xf32> to vector<16x128xf32>
    %269 = arith.subf %261, %268 : vector<16x128xf32>
    %270 = arith.mulf %269, %269 : vector<16x128xf32>
    %cst_331 = arith.constant dense<0.000000e+00> : vector<16xf32>
    %271 = vector.multi_reduction <add>, %270, %cst_331 [1] : vector<16x128xf32> to vector<16xf32>
    %272 = vector.shape_cast %271 : vector<16xf32> to vector<16x1xf32>
    %cst_332 = arith.constant 1.280000e+02 : f32
    %273 = vector.broadcast %cst_332 : f32 to vector<16x1xf32>
    %274 = arith.divf %272, %273 : vector<16x1xf32>
    %cst_333 = arith.constant 9.99999974E-6 : f32
    %275 = vector.broadcast %cst_333 : f32 to vector<16x1xf32>
    %276 = arith.addf %274, %275 : vector<16x1xf32>
    %277 = math.rsqrt %276 : vector<16x1xf32>
    %278 = vector.broadcast %277 : vector<16x1xf32> to vector<16x128xf32>
    %279 = arith.mulf %269, %278 : vector<16x128xf32>
    %280 = vector.broadcast %262 : vector<1x128xf32> to vector<16x128xf32>
    %281 = arith.mulf %279, %280 : vector<16x128xf32>
    %282 = vector.broadcast %263 : vector<1x128xf32> to vector<16x128xf32>
    %283 = arith.addf %281, %282 : vector<16x128xf32>
    %c0_334 = arith.constant 0 : index
    %c0_335 = arith.constant 0 : index
    %c0_336 = arith.constant 0 : index
    %284 = vector.load %arg14[%c0_334, %c0_335, %c0_336] : memref<1x16x128xf32, #tpu.memory_space<vmem>>, vector<1x16x128xf32>
    %285 = vector.shape_cast %284 : vector<1x16x128xf32> to vector<16x128xf32>
    %286 = vector.shape_cast %283 : vector<16x128xf32> to vector<1x16x128xf32>
    tpu.vector_store %arg14[%c0_334, %c0_335, %c0_336], %286 {strides = array<i32>} : memref<1x16x128xf32, #tpu.memory_space<vmem>>, vector<1x16x128xf32>,
    return
  }
  func.func @transform_0(%arg0: i32) -> (i32, i32, i32) {
    %c0_i32 = arith.constant 0 : i32
    %c0_i32_0 = arith.constant 0 : i32
    %c0_i32_1 = arith.constant 0 : i32
    return %arg0, %c0_i32, %c0_i32_0 : i32, i32, i32
  }
  func.func @transform_1(%arg0: i32) -> (i32, i32) {
    %c0_i32 = arith.constant 0 : i32
    %c0_i32_0 = arith.constant 0 : i32
    %c0_i32_1 = arith.constant 0 : i32
    return %c0_i32, %c0_i32_0 : i32, i32
  }
  func.func @transform_2(%arg0: i32) -> (i32, i32) {
    %c0_i32 = arith.constant 0 : i32
    %c0_i32_0 = arith.constant 0 : i32
    %c0_i32_1 = arith.constant 0 : i32
    return %c0_i32, %c0_i32_0 : i32, i32
  }
  func.func @transform_3(%arg0: i32) -> (i32, i32) {
    %c0_i32 = arith.constant 0 : i32
    %c0_i32_0 = arith.constant 0 : i32
    %c0_i32_1 = arith.constant 0 : i32
    return %c0_i32, %c0_i32_0 : i32, i32
  }
  func.func @transform_4(%arg0: i32) -> (i32, i32) {
    %c0_i32 = arith.constant 0 : i32
    %c0_i32_0 = arith.constant 0 : i32
    %c0_i32_1 = arith.constant 0 : i32
    return %c0_i32, %c0_i32_0 : i32, i32
  }
  func.func @transform_5(%arg0: i32) -> (i32, i32) {
    %c0_i32 = arith.constant 0 : i32
    %c0_i32_0 = arith.constant 0 : i32
    %c0_i32_1 = arith.constant 0 : i32
    return %c0_i32, %c0_i32_0 : i32, i32
  }
  func.func @transform_6(%arg0: i32) -> (i32, i32) {
    %c0_i32 = arith.constant 0 : i32
    %c0_i32_0 = arith.constant 0 : i32
    %c0_i32_1 = arith.constant 0 : i32
    return %c0_i32, %c0_i32_0 : i32, i32
  }
  func.func @transform_7(%arg0: i32) -> (i32, i32) {
    %c0_i32 = arith.constant 0 : i32
    %c0_i32_0 = arith.constant 0 : i32
    %c0_i32_1 = arith.constant 0 : i32
    return %c0_i32, %c0_i32_0 : i32, i32
  }
  func.func @transform_8(%arg0: i32) -> (i32, i32) {
    %c0_i32 = arith.constant 0 : i32
    %c0_i32_0 = arith.constant 0 : i32
    %c0_i32_1 = arith.constant 0 : i32
    return %c0_i32, %c0_i32_0 : i32, i32
  }
  func.func @transform_9(%arg0: i32) -> (i32, i32) {
    %c0_i32 = arith.constant 0 : i32
    %c0_i32_0 = arith.constant 0 : i32
    %c0_i32_1 = arith.constant 0 : i32
    return %c0_i32, %c0_i32_0 : i32, i32
  }
  func.func @transform_10(%arg0: i32) -> (i32, i32) {
    %c0_i32 = arith.constant 0 : i32
    %c0_i32_0 = arith.constant 0 : i32
    %c0_i32_1 = arith.constant 0 : i32
    return %c0_i32, %c0_i32_0 : i32, i32
  }
  func.func @transform_11(%arg0: i32) -> (i32, i32) {
    %c0_i32 = arith.constant 0 : i32
    %c0_i32_0 = arith.constant 0 : i32
    %c0_i32_1 = arith.constant 0 : i32
    return %c0_i32, %c0_i32_0 : i32, i32
  }
  func.func @transform_12(%arg0: i32) -> (i32, i32) {
    %c0_i32 = arith.constant 0 : i32
    %c0_i32_0 = arith.constant 0 : i32
    %c0_i32_1 = arith.constant 0 : i32
    return %c0_i32, %c0_i32_0 : i32, i32
  }
  func.func @transform_13(%arg0: i32) -> (i32, i32, i32) {
    %c0_i32 = arith.constant 0 : i32
    %c0_i32_0 = arith.constant 0 : i32
    %c0_i32_1 = arith.constant 0 : i32
    return %arg0, %c0_i32, %c0_i32_0 : i32, i32, i32
  }
}

</mosaic_0001>

<bundles_post_ra>
// kernel: encoder_forward.1
= control target key start
LH: loop header
LB: loop body
LE: loop exit
PB: predicated region body
PF: predicated region fallthrough
CT: control target
= control target key end

     0   :  { %s3704_s0 = inlined_call_operand.hbm [shape: f32[2,16,128], index: 0, kind: input, shape index: {}]   ;;  %s3705_s1 = inlined_call_operand.hbm [shape: bf16[128,384], index: 1, kind: input, shape index: {}]   ;;  %s3706_s2 = inlined_call_operand.vmem [shape: f32[1,384], index: 2, kind: input, shape index: {}]   ;;  %s3707_s3 = inlined_call_operand.hbm [shape: bf16[128,128], index: 3, kind: input, shape index: {}]   ;;  %s3708_s4 = inlined_call_operand.vmem [shape: f32[1,128], index: 4, kind: input, shape index: {}]   ;;  %s3709_s5 = inlined_call_operand.vmem [shape: f32[1,128], index: 5, kind: input, shape index: {}]   ;;  %s3710_s6 = inlined_call_operand.vmem [shape: f32[1,128], index: 6, kind: input, shape index: {}]   ;;  %s3711_s7 = inlined_call_operand.hbm [shape: bf16[128,256], index: 7, kind: input, shape index: {}]   ;;  %s3712_s8 = inlined_call_operand.vmem [shape: f32[1,256], index: 8, kind: input, shape index: {}]   ;;  %s3713_s9 = inlined_call_operand.hbm [shape: bf16[256,128], index: 9, kind: input, shape index: {}]   ;;  %s3714_s10 = inlined_call_operand.hbm [shape: f32[1,128], index: 10, kind: input, shape index: {}]   ;;  %s3715_s11 = inlined_call_operand.vmem [shape: f32[1,128], index: 11, kind: input, shape index: {}]   ;;  %s3716_s12 = inlined_call_operand.vmem [shape: f32[1,128], index: 12, kind: input, shape index: {}]   ;;  %s3717_s13 = inlined_call_operand.hbm [shape: f32[2,16,128], index: 13, kind: output, shape index: {}]  }
   0x1   :  { %3724 = sst [smem:[#allocation25_spill]] %s3705_s1 }
   0x2   :  { %3725 = sst [smem:[#allocation26_spill]] %s3710_s6 }
   0x3   :  { %3726 = sst [smem:[#allocation27_spill]] %s3711_s7 }
   0x4   :  { %3727 = sst [smem:[#allocation28_spill]] %s3712_s8 }
   0x5   :  { %3728 = sst [smem:[#allocation29_spill]] %s3715_s11 }
   0x6   :  { %3729 = sst [smem:[#allocation30_spill]] %s3716_s12 }
   0x7   :  { %3730 = sst [smem:[#allocation31_spill]] %s3717_s13 }
   0x8   :  { %18 = vsyncpa [#allocation9], 0 }
   0x9   :  { %20 = vsyncpa [#allocation9 + $0x1], 0 }
   0xa   :  { %21 = vsyncpa [#allocation12], 0 }
   0xb   :  { %22 = vsyncpa [#allocation15], 0 }
   0xc   :  { %23 = vsyncpa [#allocation18], 0 }
   0xd   :  { %24 = vsyncpa [#allocation10], 0 }
   0xe   :  { %26 = vsyncpa [#allocation10 + $0x1], 0  ;;  %s3121_s25 = smov 0   ;;  %s3123_s26 = smov 0  }
   0xf   :  { %s3125_s27 = smov 0   ;;  %s3127_s28 = smov 0  }
  0x10 LB: > { %s3030_s29 = smov [#allocation11]   ;;  %s3142_s14 = sadd.s32 4294967295, %s3028_s28   ;;  %s3028_s28 = sphi %s3127_s28, %s3761_s28   ;;  %s3024_s27 = sphi %s3125_s27, %s3760_s27   ;;  %s3020_s26 = sphi %s3123_s26, %s3759_s26   ;;  %s3016_s25 = sphi %s3121_s25, %s3758_s25  }
  0x11   : > { %s353_s30 = sshll.u32 %s3030_s29, 4  ;;  %p2300_p0 = scmp.ge.s32.totalorder %s3028_s28, 1  ;;  %s3147_s30 = int_to_ptr.vmem [resolvable:$true] %s353_s30 }
  0x12   : > { %p3719_p1 = scmp.eq.s32.totalorder %s3142_s14, 0  ;;  %p341_p2 = scmp.lt.s32.totalorder %s3028_s28, 3 }
  0x13   : > { %s3031_s16 = smov [#allocation14]   ;;  %s3032_s19 = smov [#allocation13]  }
  0x14   : > { %p3149_p3 = pnand %p2300_p0, %p341_p2  ;;  %s391_s17 = sshll.u32 %s3031_s16, 4  ;;  %s3162_s17 = int_to_ptr.vmem [resolvable:$true] %s391_s17 }
  0x15   : > { %s3164_s20 = sshll.u32 %s3032_s19, 4  ;;  %s3733_s1 = sld [smem:[#allocation25_spill]]  ;;  %s370_s20 = int_to_ptr.vmem [resolvable:$true] %s3164_s20 }
  0x16   : > { %s3731_s15 = scalar_select %p3149_p3, 1, 0 }
  0x17   : > { %p2571_p5 = pneg %p3149_p3 }
  0x19   : > { %p3158_p6 = pnand %p2571_p5, %p3719_p1 }
  0x1b   : > { %s2780_s23 = scalar_lea.hbm %s3733_s1, 3072  ;;  %p3174_p8 = pneg %p3158_p6 }
  0x1c   : > { %p2781_p7 = scmp.ne.s32.totalorder %s3733_s1, %s2780_s23  ;;  %p2787_p11 = scmp.lt.u32.totalorder %s2780_s23, %s3733_s1 }
  0x1e   : > { %p2783_p9 = pnand %p3174_p8, %p2781_p7 }
  0x20   : > { %p2784_p10 = pneg %p2783_p9 }
  0x22   : > { %p2789_p12 = pnand %p2787_p11, %p2784_p10 }
  0x24   : > { %2792 = shalt.err (!%p2789_p12)
}
  0x25   : > { %s2793_s21 = scalar_lea.vmem %s3147_s30, 3072  ;;  %p2801_p5 = scmp.lt.s32.totalorder %s3147_s30, %s3147_s30 }
  0x26   : > { %p2794_p13 = scmp.ne.s32.totalorder %s3147_s30, %s2793_s21  ;;  %p2802_p4 = scmp.lt.s32.totalorder %s2793_s21, %s2793_s21 }
  0x28   : > { %p2796_p0 = pnand %p2794_p13, %p3174_p8  ;;  %p2803_p7 = por %p2802_p4, %p2801_p5 }
  0x2a   : > { %p2797_p2 = pneg %p2796_p0 }
  0x2c   : > { %p2804_p9 = pnand %p2803_p7, %p2797_p2 }
  0x2e   : > { %2807 = shalt.err (!%p2804_p9)
}
  0x2f   : > { %s3033_s22 = smov 192   ;;  %s3034_s13 = smov 12  }
  0x30   : > { %2574 = dma.hbm_to_vmem [thread:$0]  (!%p3158_p6), %s3733_s1, 3072, %s3147_s30, [#allocation12], %s3033_s22, %s3033_s22, %s3034_s13  }
  0x31   : > { %s3735_s7 = sld [smem:[#allocation27_spill]] }
  0x37   : > { %s2808_s12 = scalar_lea.hbm %s3735_s7, 2048 }
  0x38   : > { %p2809_p4 = scmp.ne.s32.totalorder %s3735_s7, %s2808_s12  ;;  %p2815_p12 = scmp.lt.u32.totalorder %s2808_s12, %s3735_s7 }
  0x3a   : > { %p2811_p10 = pnand %p2809_p4, %p3174_p8 }
  0x3c   : > { %p2812_p11 = pneg %p2811_p10 }
  0x3e   : > { %p2817_p13 = pnand %p2815_p12, %p2812_p11 }
  0x40   : > { %2820 = shalt.err (!%p2817_p13)
}
  0x41   : > { %s2821_s30 = scalar_lea.vmem %s3162_s17, 2048  ;;  %p2829_p7 = scmp.lt.s32.totalorder %s3162_s17, %s3162_s17 }
  0x42   : > { %p2822_p0 = scmp.ne.s32.totalorder %s3162_s17, %s2821_s30  ;;  %p2830_p9 = scmp.lt.s32.totalorder %s2821_s30, %s2821_s30 }
  0x44   : > { %p2824_p2 = pnand %p2822_p0, %p3174_p8  ;;  %p2831_p4 = por %p2830_p9, %p2829_p7 }
  0x46   : > { %p2825_p5 = pneg %p2824_p2 }
  0x48   : > { %p2832_p10 = pnand %p2831_p4, %p2825_p5 }
  0x4a   : > { %2835 = shalt.err (!%p2832_p10)
}
  0x4b   : > { %s3721_s8 = smov 128   ;;  %s3722_s6 = smov 8  }
  0x4c   : > { %2580 = dma.hbm_to_vmem [thread:$0]  (!%p3158_p6), %s3735_s7, 2048, %s3162_s17, [#allocation15], %s3721_s8, %s3721_s8, %s3722_s6  }
  0x4d   : > { %s2836_s23 = scalar_lea.hbm %s3707_s3, 1024 }
  0x4e   : > { %p2837_p11 = scmp.ne.s32.totalorder %s3707_s3, %s2836_s23  ;;  %p2843_p0 = scmp.lt.u32.totalorder %s2836_s23, %s3707_s3 }
  0x50   : > { %p2839_p12 = pnand %p2837_p11, %p3174_p8 }
  0x52   : > { %p2840_p13 = pneg %p2839_p12 }
  0x54   : > { %p2845_p2 = pnand %p2843_p0, %p2840_p13 }
  0x56   : > { %2848 = shalt.err (!%p2845_p2)
}
  0x57   : > { %s2849_s30 = scalar_lea.vmem %s370_s20, 1024  ;;  %p2857_p4 = scmp.lt.s32.totalorder %s370_s20, %s370_s20 }
  0x58   : > { %p2850_p5 = scmp.ne.s32.totalorder %s370_s20, %s2849_s30  ;;  %p2858_p10 = scmp.lt.s32.totalorder %s2849_s30, %s2849_s30 }
  0x5a   : > { %p2852_p7 = pnand %p2850_p5, %p3174_p8  ;;  %p2859_p1 = por %p2858_p10, %p2857_p4 }
  0x5c   : > { %p2853_p9 = pneg %p2852_p7 }
  0x5e   : > { %p2860_p3 = pnand %p2859_p1, %p2853_p9 }
  0x60   : > { %2863 = shalt.err (!%p2860_p3)
}
  0x61   : > { %s3037_s17 = smov 64   ;;  %s3038_s11 = smov 4  }
  0x62   : > { %2577 = dma.hbm_to_vmem [thread:$0]  (!%p3158_p6), %s3707_s3, 1024, %s370_s20, [#allocation12], %s3037_s17, %s3037_s17, %s3038_s11  }
  0x63   : > { %s3039_s13 = smov [#allocation16]   ;;  %s3040_s24 = smov [#allocation17]  }
  0x64   : > { %s407_s23 = sshll.u32 %s3039_s13, 4  ;;  %s421_s29 = sshll.u32 %s3040_s24, 4  ;;  %s408_s23 = int_to_ptr.vmem [resolvable:$true] %s407_s23  ;;  %s422_s29 = int_to_ptr.vmem [resolvable:$true] %s421_s29 }
  0x65   : > { %s2864_s30 = scalar_lea.hbm %s3713_s9, 2048 }
  0x66   : > { %p2865_p1 = scmp.ne.s32.totalorder %s3713_s9, %s2864_s30  ;;  %p2871_p12 = scmp.lt.u32.totalorder %s2864_s30, %s3713_s9 }
  0x68   : > { %p2867_p3 = pnand %p2865_p1, %p3174_p8 }
  0x6a   : > { %p2868_p11 = pneg %p2867_p3 }
  0x6c   : > { %p2873_p13 = pnand %p2871_p12, %p2868_p11 }
  0x6e   : > { %2876 = shalt.err (!%p2873_p13)
}
  0x6f   : > { %s2877_s20 = scalar_lea.vmem %s408_s23, 2048  ;;  %p2885_p7 = scmp.lt.s32.totalorder %s408_s23, %s408_s23 }
  0x70   : > { %p2878_p0 = scmp.ne.s32.totalorder %s408_s23, %s2877_s20  ;;  %p2886_p9 = scmp.lt.s32.totalorder %s2877_s20, %s2877_s20 }
  0x72   : > { %p2880_p2 = pnand %p2878_p0, %p3174_p8  ;;  %p2887_p4 = por %p2886_p9, %p2885_p7 }
  0x74   : > { %p2881_p5 = pneg %p2880_p2 }
  0x76   : > { %p2888_p10 = pnand %p2887_p4, %p2881_p5 }
  0x78   : > { %2891 = shalt.err (!%p2888_p10)
}
  0x79   : > { %2583 = dma.hbm_to_vmem [thread:$0]  (!%p3158_p6), %s3713_s9, 2048, %s408_s23, [#allocation15], %s3037_s17, %s3037_s17, %s3038_s11  }
  0x7a   : > { %s2892_s12 = scalar_lea.hbm %s3714_s10, 16 }
  0x7b   : > { %p2893_p1 = scmp.ne.s32.totalorder %s3714_s10, %s2892_s12  ;;  %p2899_p12 = scmp.lt.u32.totalorder %s2892_s12, %s3714_s10 }
  0x7d   : > { %p2895_p3 = pnand %p2893_p1, %p3174_p8 }
  0x7f   : > { %p2896_p11 = pneg %p2895_p3 }
  0x81   : > { %p2901_p13 = pnand %p2899_p12, %p2896_p11 }
  0x83   : > { %2904 = shalt.err (!%p2901_p13)
}
  0x84   : > { %s2905_s21 = scalar_lea.vmem %s422_s29, 16  ;;  %s2912_s17 = scalar_lea.vmem %s422_s29, 32 }
  0x85   : > { %p2906_p0 = scmp.ne.s32.totalorder %s422_s29, %s2905_s21  ;;  %p2913_p7 = scmp.lt.s32.totalorder %s422_s29, %s422_s29 }
  0x86   : > { %p2914_p9 = scmp.lt.s32.totalorder %s2912_s17, %s2905_s21 }
  0x87   : > { %p2908_p2 = pnand %p2906_p0, %p3174_p8 }
  0x88   : > { %p2915_p4 = por %p2914_p9, %p2913_p7 }
  0x89   : > { %p2909_p5 = pneg %p2908_p2 }
  0x8b   : > { %p2916_p10 = pnand %p2915_p4, %p2909_p5 }
  0x8d   : > { %2919 = shalt.err (!%p2916_p10)
}
  0x8e   : > { %2586 = dma.hbm_to_vmem [thread:$0]  (!%p3158_p6), %s3714_s10, 16, %s422_s29, [#allocation18]  }
  0x8f   : > { %s2299_s16 = sadd.s32 4294967294, %s3028_s28   ;;  %s3278_s18 = sadd.s32 1, %s3028_s28  }
  0x90   : > { %s39_s30 = sadd.s32 1, %s3024_s27  ;;  %s36_s20 = ssub.s32 %s3028_s28, %s3278_s18 }
  0x91   : > { %p46_p8 = scmp.ne.s32.totalorder %s3024_s27, %s3020_s26  ;;  %p37_p1 = scmp.eq.s32.totalorder %s36_s20, 0 }
  0x92   : > { %p47_p3 = scmp.eq.s32.totalorder %s3028_s28, 0  ;;  %p52_p11 = scmp.ne.s32.totalorder %s3020_s26, %s3016_s25 }
  0x93   : > { %p328_p12 = scmp.eq.s32.totalorder %s3142_s14, 1  ;;  %p3736_p0 = scmp.eq.s32.totalorder %s3142_s14, 0 }
  0x94   : > { %s3290_s8 = scalar_select %p37_p1, %s3024_s27, %s39_s30  }
  0x95   : > { %p48_p13 = por %p47_p3, %p46_p8  ;;  %p3294_p2 = por %p3736_p0, %p52_p11 }
  0x96   : > { %p3298_p6 = por %p328_p12, %p46_p8  ;;  %p334_p5 = scmp.eq.s32.totalorder %s2299_s16, 1 }
  0x97   : > { %p2600_p7 = scmp.lt.s32.totalorder %s3028_s28, 2  ;;  %s438_s1 = sand.u32 1, %s3024_s27  }
  0x98   : > { %s3738_s29 = scalar_select %p3298_p6, 1, 0 }
  0x99   : > { %p3304_p9 = por %p334_p5, %p52_p11  ;;  %s2307_s12 = sshll.u32 %s438_s1, 4 }
  0x9a   : > { %s2401_s22 = sshll.u32 %s3028_s28, 8  ;;  %s442_s21 = scalar_lea.vmem [#allocation8], %s2307_s12 }
  0x9b   : > { %s3739_s7 = scalar_select %p3304_p9, 1, 0 }
  0x9c   : > { %s3312_s19 = scalar_lea.hbm %s3704_s0, %s2401_s22  ;;  %s449_s17 = sshll.u32 %s442_s21, 4  ;;  %s3318_s17 = int_to_ptr.vmem [resolvable:$true] %s449_s17 }
  0x9d   : > { %p3314_p4 = pnand %p2600_p7, %p48_p13  ;;  %s3320_s23 = scalar_lea.sflag [#allocation9], %s438_s1 }
  0x9e   : > { %s2920_s16 = scalar_lea.hbm %s3312_s19, 256  ;;  %s2925_s12 = scalar_lea.hbm %s3704_s0, 512 }
  0x9f   : > { %p2921_p10 = scmp.ne.s32.totalorder %s3312_s19, %s2920_s16  ;;  %p2922_p8 = pneg %p3314_p4 }
  0xa0   : > { %p2926_p11 = scmp.lt.u32.totalorder %s3312_s19, %s3704_s0  ;;  %p2927_p12 = scmp.lt.u32.totalorder %s2925_s12, %s2920_s16 }
  0xa1   : > { %p2923_p1 = pnand %p2922_p8, %p2921_p10  ;;  %p2929_p0 = scmp.lt.u32.totalorder %s2920_s16, %s3312_s19 }
  0xa2   : > { %p2928_p13 = por %p2927_p12, %p2926_p11 }
  0xa3   : > { %p2924_p3 = pneg %p2923_p1 }
  0xa4   : > { %p2930_p5 = por %p2929_p0, %p2928_p13 }
  0xa6   : > { %p2931_p7 = pnand %p2930_p5, %p2924_p3 }
  0xa8   : > { %2934 = shalt.err (!%p2931_p7)
}
  0xa9   : > { %s2935_s1 = scalar_lea.vmem %s3318_s17, 256  ;;  %s3041_s24 = smov [#allocation8]  }
  0xaa   : > { %p2936_p10 = scmp.ne.s32.totalorder %s3318_s17, %s2935_s1  ;;  %s2940_s21 = sshll.u32 %s3041_s24, 4  ;;  %s2941_s21 = int_to_ptr.vmem [resolvable:$false] %s2940_s21 }
  0xab   : > { %s2942_s30 = scalar_lea.vmem %s2941_s21, 512  ;;  %p2943_p6 = scmp.lt.s32.totalorder %s3318_s17, %s2941_s21 }
  0xac   : > { %p2938_p1 = pnand %p2936_p10, %p2922_p8  ;;  %p2944_p11 = scmp.lt.s32.totalorder %s2942_s30, %s2935_s1 }
  0xae   : > { %p2939_p9 = pneg %p2938_p1  ;;  %p2945_p12 = por %p2944_p11, %p2943_p6 }
  0xb0   : > { %p2946_p13 = pnand %p2945_p12, %p2939_p9 }
  0xb2   : > { %2949 = shalt.err (!%p2946_p13)
}
  0xb3   : > { %s3741_s16 = smov 8   ;;  %s3742_s20 = smov 128  }
  0xb4   : > { %2590 = dma.hbm_to_vmem [thread:$0]  (!%p3314_p4), %s3312_s19, 256, %s3318_s17, %s3320_s23, %s3742_s20, %s3742_s20, %s3741_s16  }
  0xb5   : > { %p3743_p8 = scmp.ne.s32.totalorder %s3731_s15, 0 }
  0xb6   : > { %s3354_s12 = sand.u32 (!%p3743_p8), 1, %s3020_s26  }
  0xb7   : > { %461 = sbr.rel (%p3743_p8) target bundleno = 3490 (0xda2), region = 72  ;;  %s2311_s22 = sshll.u32 (!%p3743_p8), %s3354_s12, 4 }
  0xb8   : > { %s464_s13 = scalar_lea.sflag (!%p3743_p8), [#allocation9], %s3354_s12  ;;  %s3360_s11 = scalar_lea.vmem (!%p3743_p8), [#allocation8], %s2311_s22 }
  0xbe   : > { %2995 = dma.done.wait (%p3294_p2), %s464_s13, 256  }
  0xbf   : > { %2997 = vsyncadd (%p3294_p2), %s464_s13, 4294967040  ;;  %p3744_p6 = scmp.eq.s32.totalorder %s3142_s14, 0 }
  0xc1   : > { %2999 = dma.done.wait (%p3744_p6), [#allocation12], 4096   ;;  %p3745_p9 = pmov %p3744_p6 }
  0xc2   : > { %p3746_p4 = pmov %p3744_p6 }
  0xc3   : > { %3001 = vsyncadd (%p3745_p9), [#allocation12], 4294963200 }
  0xc4   : > { %3003 = dma.done.wait (%p3746_p4), [#allocation15], 4096   ;;  %p3747_p3 = pmov %p3746_p4 }
  0xc6   : > { %3005 = vsyncadd (%p3747_p3), [#allocation15], 4294963200  ;;  %p3748_p0 = pmov %p3747_p3 }
  0xc8   : > { %3007 = dma.done.wait (%p3748_p0), [#allocation18], 16   ;;  %p3749_p5 = pmov %p3748_p0 }
  0xc9   : > { %v3042_v0 = vmov 0   ;;  %v2658_v1 = vld [vmem:[#allocation11 + $0x4] ss:$12 sps:$4 sm:$0xff]   ;;  %v2660_v2 = vld [vmem:[#allocation11] ss:$12 sps:$4 sm:$0xff]   ;;  %v3043_v21 = vmov 0.0   ;;  %v568_v27 = vlaneseq }
  0xca   : > { %3009 = vsyncadd (%p3749_p5), [#allocation18], 4294967280  ;;  %743 = vmatprep.mubr.bf16.mxu0 %v3042_v0  ;;  %711 = vmatprep.subr.bf16.mxu0 %v2658_v1  ;;  %v2661_v3 = vld [vmem:[#allocation11 + $0x1c] ss:$12 sps:$4 sm:$0xff]   ;;  %v2663_v4 = vld [vmem:[#allocation11 + $0x18] ss:$12 sps:$4 sm:$0xff]  }
  0xcb   : > { %712 = vmatpush1.bf16.msra.mxu0 %v2660_v2  ;;  %v2664_v5 = vld [vmem:[#allocation11 + $0x34] ss:$12 sps:$4 sm:$0xff]   ;;  %v2666_v6 = vld [vmem:[#allocation11 + $0x30] ss:$12 sps:$4 sm:$0xff]   ;;  %v2667_v7 = vld [vmem:[#allocation11 + $0x4c] ss:$12 sps:$4 sm:$0xff]   ;;  %2459 = vmatprep.subr.bf16.mxu1 %v3043_v21 }
  0xcc   : > { %713 = vmatprep.subr.bf16.mxu0 %v2661_v3  ;;  %v2669_v8 = vld [vmem:[#allocation11 + $0x48] ss:$12 sps:$4 sm:$0xff]   ;;  %v2670_v9 = vld [vmem:[#allocation11 + $0x64] ss:$12 sps:$4 sm:$0xff]   ;;  %v2672_v10 = vld [vmem:[#allocation11 + $0x60] ss:$12 sps:$4 sm:$0xff]  }
  0xcd   : > { %v2673_v11 = vld [vmem:[#allocation11 + $0x7c] ss:$12 sps:$4 sm:$0xff]   ;;  %v2675_v12 = vld [vmem:[#allocation11 + $0x78] ss:$12 sps:$4 sm:$0xff]   ;;  %v2676_v13 = vld [vmem:[#allocation11 + $0x94] ss:$12 sps:$4 sm:$0xff]  }
  0xce   : > { %v2678_v14 = vld [vmem:[#allocation11 + $0x90] ss:$12 sps:$4 sm:$0xff]   ;;  %v2679_v15 = vld [vmem:[#allocation11 + $0xac] ss:$12 sps:$4 sm:$0xff]   ;;  %v2681_v16 = vld [vmem:[#allocation11 + $0xa8] ss:$12 sps:$4 sm:$0xff]  }
  0xcf   : > { %714 = vmatpush1.bf16.msra.mxu0 %v2663_v4  ;;  %v531_v17 = vld [vmem:[%s3360_s11] sm:$0xff]  ;;  %v532_v18 = vld [vmem:[%s3360_s11 + $0x8] sm:$0xff]  ;;  %v3389_v28 = vshrl.u32 %v568_v27, 7  ;;  %vm802_vm0 = vcmask 257024   ;;  %vm3044_vm1 = vmmov 0   ;;  %s3045_s19 = smov 32  }
  0xd0   : > { %715 = vmatprep.subr.bf16.mxu0 %v2664_v5  ;;  %v533_v19 = vpack.c.bf16 %v532_v18, %v531_v17  ;;  %v2682_v20 = vld [vmem:[#allocation11 + $0x8] ss:$12 sps:$4 sm:$0xff]   ;;  %v2683_v22 = vld [vmem:[#allocation11 + $0x20] ss:$12 sps:$4 sm:$0xff]   ;;  %v2684_v23 = vld [vmem:[#allocation11 + $0x38] ss:$12 sps:$4 sm:$0xff]   ;;  %2475 = vmatprep.mubr.msk.bf16.mxu1 %vm3044_vm1, %v3043_v21 }
  0xd1   : > { %2460 = vmatpush3.bf16.msra.mxu1 %v2682_v20  ;;  %v2685_v24 = vld [vmem:[#allocation11 + $0x50] ss:$12 sps:$4 sm:$0xff]   ;;  %v2686_v25 = vld [vmem:[#allocation11 + $0x68] ss:$12 sps:$4 sm:$0xff]   ;;  %v2687_v26 = vld [vmem:[#allocation11 + $0x80] ss:$12 sps:$4 sm:$0xff]  }
  0xd2   : > { %2461 = vmatprep.subr.bf16.mxu1 %v3043_v21  ;;  %v570_v29 = vsub.s32 0, %v3389_v28  ;;  %v3395_v30 = vld [vmem:[%s3706_s2] sm:$0x7]  ;;  %v574_v31 = vsub.s32 1, %v3389_v28  ;;  %v2688_v35 = vld [vmem:[#allocation11 + $0x98] ss:$12 sps:$4 sm:$0xff]  }
  0xd3   : > { %716 = vmatpush1.bf16.msra.mxu0 %v2666_v6  ;;  %v2689_v43 = vld [vmem:[#allocation11 + $0xb0] ss:$12 sps:$4 sm:$0xff]   ;;  %s3046_s17 = smov 96   ;;  %s3047_s23 = smov 64   ;;  %vm1013_vm2 = vcmask 261124   ;;  %vm871_vm3 = vcmask 261120  }
  0xd4   : > { %717 = vmatprep.subr.bf16.mxu0 %v2667_v7  ;;  %v571_v32 = vrot.slane %v3395_v30, %v570_v29  ;;  %v575_v33 = vrot.slane %v3395_v30, %v574_v31  ;;  %v578_v4 = vsub.s32 2, %v3389_v28  ;;  %vm919_vm4 = vcmask 130048   ;;  %s3750_s13 = sld [smem:[#allocation26_spill]]  ;;  %s3751_s6 = sld [smem:[#allocation28_spill]] }
  0xd5   : > { %2462 = vmatpush3.bf16.msra.mxu1 %v2683_v22  ;;  %vm996_vm5 = vcmask 519424   ;;  %vm1003_vm6 = vcmask 781824   ;;  %vm1010_vm7 = vcmask 1044224   ;;  %s3753_s21 = sld [smem:[#allocation30_spill]]  ;;  %s2402_s30 = sshll.u32 %s3142_s14, 8 }
  0xd6   : > { %2463 = vmatprep.subr.bf16.mxu1 %v3043_v21  ;;  %v579_v5 = vrot.slane %v3395_v30, %v578_v4  ;;  %s529_s16 = scalar_lea.vmem [#allocation19], %s2311_s22  ;;  %s3754_s15 = sld [smem:[#allocation31_spill]] }
  0xd7   : > { %718 = vmatpush1.bf16.msra.mxu0 %v2669_v8  ;;  %s2178_s20 = sshll.u32 %s529_s16, 4  ;;  %p3755_p7 = scmp.ne.s32.totalorder %s3738_s29, 0  ;;  %s3660_s20 = int_to_ptr.vmem [resolvable:$true] %s2178_s20 }
  0xd8   : > { %719 = vmatprep.subr.bf16.mxu0 %v2670_v9  ;;  %s2950_s14 = scalar_lea.vmem %s3660_s20, 256  ;;  %s3048_s22 = smov [#allocation19]  }
  0xd9   : > { %2464 = vmatpush3.bf16.msra.mxu1 %v2684_v23  ;;  %p2951_p2 = scmp.ne.s32.totalorder %s3660_s20, %s2950_s14 }
  0xda   : > { %2465 = vmatprep.subr.bf16.mxu1 %v3043_v21 }
  0xdb   : > { %720 = vmatpush1.bf16.msra.mxu0 %v2672_v10  ;;  %p2952_p10 = pnand %p2951_p2, %p3755_p7 }
  0xdc   : > { %721 = vmatprep.subr.bf16.mxu0 %v2673_v11 }
  0xdd   : > { %2466 = vmatpush3.bf16.msra.mxu1 %v2685_v24  ;;  %p2953_p1 = pneg %p2952_p10 }
  0xde   : > { %2467 = vmatprep.subr.bf16.mxu1 %v3043_v21 }
  0xdf   : > { %722 = vmatpush1.bf16.msra.mxu0 %v2675_v12 }
  0xe0   : > { %723 = vmatprep.subr.bf16.mxu0 %v2676_v13 }
  0xe1   : > { %2468 = vmatpush3.bf16.msra.mxu1 %v2686_v25 }
  0xe2   : > { %2469 = vmatprep.subr.bf16.mxu1 %v3043_v21 }
  0xe3   : > { %724 = vmatpush1.bf16.msra.mxu0 %v2678_v14 }
  0xe4   : > { %725 = vmatprep.subr.bf16.mxu0 %v2679_v15 }
  0xe5   : > { %2470 = vmatpush3.bf16.msra.mxu1 %v2687_v26 }
  0xe6   : > { %2471 = vmatprep.subr.bf16.mxu1 %v3043_v21 }
  0xe7   : > { %726 = vmatpush1.bf16.msra.mxu0 %v2681_v16 }
  0xe8   : > { %2503 = vmatprep.subr.bf16.mxu0 %v3043_v21 }
  0xe9   : > { %2472 = vmatpush3.bf16.msra.mxu1 %v2688_v35 }
  0xea   : > { %744 = vmatmul.mubr.bf16.vlgmr.msra.gmra.mrb[0].mxu0 %v533_v19  ;;  %2473 = vmatprep.subr.bf16.mxu1 %v3043_v21 }
  0xeb   : > { %2505 = vmatprep.mubr.msk.bf16.mxu0 %vm3044_vm1, %v3043_v21 }
  0xed   : > { %2474 = vmatpush3.bf16.msra.mxu1 %v2689_v43 }
  0xee   : > { %2479 = vmatprep.subr.bf16.mxu1 %v3043_v21 }
  0xf0   : > { %2476 = vmatmul.mubr.bf16.vlgmr.msra.gmra.mrb[0].mxu1 %v533_v19 }
  0xf1   : > { %2481 = vmatprep.mubr.msk.bf16.mxu1 %vm3044_vm1, %v3043_v21 }
 0x1bd   : > { %v745_v34 = vpop.f32.mrb[0].mxu0 }
 0x1be   : > { %v746_v36 = vadd.f32 %v745_v34, %v571_v32  ;;  %v747_v37 = vpop.f32.mrb[1].mxu0 }
 0x1bf   : > { %v748_v38 = vadd.f32 %v747_v37, %v575_v33  ;;  %v749_v39 = vpop.f32.mrb[2].mxu0 }
 0x1c0   : > { %795 = vst [vmem:[#allocation2] sm:$0xff] %v746_v36  ;;  %v750_v40 = vadd.f32 %v749_v39, %v571_v32  ;;  %v751_v41 = vpop.f32.mrb[3].mxu0 }
 0x1c1   : > { %796 = vst [vmem:[#allocation2 + $0x8] sm:$0xff] %v748_v38  ;;  %v752_v42 = vadd.f32 %v751_v41, %v575_v33 }
 0x1c2   : > { %798 = vst [vmem:[#allocation2 + $0x18] sm:$0xff] %v750_v40 }
 0x1c3   : > { %799 = vst [vmem:[#allocation2 + $0x20] sm:$0xff] %v752_v42  ;;  %v788_v6 = vpop.f32.mrb[0].mxu1 }
 0x1c4   : > { %v789_v7 = vadd.f32 %v788_v6, %v579_v5  ;;  %v2477_v8 = vpop.f32.mrb[1].mxu1 }
 0x1c5   : > { %v791_v9 = vpop.f32.mrb[2].mxu1 }
 0x1c6   : > { %797 = vst [vmem:[#allocation2 + $0x10] sm:$0xff] %v789_v7  ;;  %v792_v10 = vadd.f32 %v791_v9, %v579_v5  ;;  %v2478_v11 = vpop.f32.mrb[3].mxu1 }
 0x1c7   : > { %v801_v44 = vld [vmem:[#allocation2] sm:$0xf]  ;;  %v1012_v60 = vld [vmem:[#allocation2] sm:$0xf0] }
 0x1c8   : > { %803 = vst.msk [vmem:[#allocation3] sm:$0xf] %vm802_vm0, %v801_v44  ;;  %v804_v45 = vld [vmem:[#allocation2 + $0x8] sm:$0xf]  ;;  %v808_v48 = vld [vmem:[#allocation2] sm:$0xf] }
 0x1c9   : > { %v850_v46 = vld [vmem:[#allocation2 + $0x8] sm:$0xf]  ;;  %805 = vst.msk [vmem:[#allocation4] sm:$0xf] %vm802_vm0, %v804_v45  ;;  %v844_v50 = vld [vmem:[#allocation2] sm:$0xf] }
 0x1ca   : > { %852 = vrot.lane.b32.xlu1 %v850_v46, %s3045_s19  ;;  %v814_v47 = vld [vmem:[#allocation2 + $0x8] sm:$0xf]  ;;  %v826_v51 = vld [vmem:[#allocation2] sm:$0xf]  ;;  %v1015_v57 = vld [vmem:[#allocation2 + $0x8] sm:$0xf0] }
 0x1cb   : > { %816 = vrot.lane.b32.xlu0 %v814_v47, %s3046_s17  ;;  %v832_v49 = vld [vmem:[#allocation2 + $0x8] sm:$0xf]  ;;  %800 = vst [vmem:[#allocation2 + $0x28] sm:$0xff] %v792_v10  ;;  %v1043_v23 = vld [vmem:[#allocation2 + $0x8] sm:$0xf0] }
 0x1cc   : > { %v1025_v24 = vld [vmem:[#allocation2 + $0x8] sm:$0xf0]  ;;  %v1019_v25 = vld [vmem:[#allocation2] sm:$0xf0]  ;;  %v1248_v32 = vld [vmem:[#allocation2 + $0x20] sm:$0xf] }
 0x1cd   : > { %v806_v12 = vld [vmem:[#allocation2 + $0x10] sm:$0xf]  ;;  %v1061_v26 = vld [vmem:[#allocation2 + $0x8] sm:$0xf0]  ;;  %v1055_v27 = vld [vmem:[#allocation2] sm:$0xf0] }
 0x1ce   : > { %810 = vrot.lane.b32.xlu1 %v808_v48, %s3046_s17  ;;  %807 = vst.msk [vmem:[#allocation5] sm:$0xf] %vm802_vm0, %v806_v12  ;;  %v820_v19 = vld [vmem:[#allocation2 + $0x10] sm:$0xf]  ;;  %v1037_v30 = vld [vmem:[#allocation2] sm:$0xf0] }
 0x1cf   : > { %834 = vrot.lane.b32.xlu0 %v832_v49, %s3047_s23  ;;  %v838_v20 = vld [vmem:[#allocation2 + $0x10] sm:$0xf]  ;;  %v1230_v33 = vld [vmem:[#allocation2 + $0x20] sm:$0xf]  ;;  %v1224_v34 = vld [vmem:[#allocation2 + $0x18] sm:$0xf] }
 0x1d0   : > { %v856_v22 = vld [vmem:[#allocation2 + $0x10] sm:$0xf]  ;;  %v1266_v35 = vld [vmem:[#allocation2 + $0x20] sm:$0xf]  ;;  %v1242_v36 = vld [vmem:[#allocation2 + $0x18] sm:$0xf] }
 0x1d1   : > { %v1435_v37 = vld [vmem:[#allocation2 + $0x20] sm:$0xf0]  ;;  %v1447_v39 = vld [vmem:[#allocation2 + $0x18] sm:$0xf0] }
 0x1d2   : > { %846 = vrot.lane.b32.xlu1 %v844_v50, %s3045_s19  ;;  %v1471_v38 = vld [vmem:[#allocation2 + $0x20] sm:$0xf0]  ;;  %v1423_v9 = vld [vmem:[#allocation2 + $0x18] sm:$0xf0] }
 0x1d3   : > { %828 = vrot.lane.b32.xlu0 %v826_v51, %s3047_s23  ;;  %v1017_v51 = vld [vmem:[#allocation2 + $0x10] sm:$0xf0] }
 0x23c   : > { %v853_v52 = vpop.permute.xlu1 %852 }
 0x23d   : > { %855 = vst.msk [vmem:[#allocation4 + $0xc] sm:$0xf] %vm802_vm0, %v853_v52  ;;  %v817_v53 = vpop.permute.xlu0 %816 }
 0x23e   : > { %819 = vst.msk [vmem:[#allocation4 + $0x4] sm:$0xf] %vm802_vm0, %v817_v53 }
 0x240   : > { %v811_v54 = vpop.permute.xlu1 %810 }
 0x241   : > { %v835_v55 = vpop.permute.xlu0 %834  ;;  %813 = vst.msk [vmem:[#allocation3 + $0x4] sm:$0xf] %vm802_vm0, %v811_v54 }
 0x242   : > { %837 = vst.msk [vmem:[#allocation4 + $0x8] sm:$0xf] %vm802_vm0, %v835_v55 }
 0x244   : > { %v847_v56 = vpop.permute.xlu1 %846 }
 0x245   : > { %v829_v58 = vpop.permute.xlu0 %828  ;;  %849 = vst.msk [vmem:[#allocation3 + $0xc] sm:$0xf] %vm802_vm0, %v847_v56  ;;  %v865_v59 = vld [vmem:[#allocation4] sm:$0xff] }
 0x246   : > { %831 = vst.msk [vmem:[#allocation3 + $0x8] sm:$0xf] %vm802_vm0, %v829_v58 }
 0x247   : > { %1016 = vst.msk [vmem:[#allocation4 - $0x4] sm:$0xf0] %vm1013_vm2, %v1015_v57 }
 0x248   : > { %v862_v61 = vld [vmem:[#allocation3] sm:$0xff] }
 0x249   : > { %v866_v62 = vld [vmem:[#allocation4 + $0x8] sm:$0xff]  ;;  %1014 = vst.msk [vmem:[#allocation3 - $0x4] sm:$0xf0] %vm1013_vm2, %v1012_v60 }
 0x24a   : > { %v867_v63 = vpack.c.bf16 %v866_v62, %v865_v59 }
 0x24c   : > { %v876_v1 = vsel %vm871_vm3, %v867_v63, 0 }
 0x24d   : > { %2480 = vmatpush3.bf16.xpose.msra.mxu1 %v876_v1  ;;  %v863_v2 = vld [vmem:[#allocation3 + $0x8] sm:$0xff] }
 0x24e   : > { %2485 = vmatprep.subr.bf16.mxu1 %v3043_v21  ;;  %v864_v3 = vpack.c.bf16 %v863_v2, %v862_v61  ;;  %v1218_v61 = vld [vmem:[#allocation2 + $0x18] sm:$0xf]  ;;  %v1220_v2 = vld [vmem:[#allocation2 + $0x20] sm:$0xf] }
 0x254   : > { %2482 = vmatmul.mubr.msk.bf16.vlgmr.msra.gmra.mrb[4].mxu1 %vm871_vm3, %v864_v3 }
 0x255   : > { %2487 = vmatprep.mubr.msk.bf16.mxu1 %vm3044_vm1, %v3043_v21 }
 0x327   : > { %v912_v13 = vpop.f32.mrb[4].mxu1 }
 0x328   : > { %v2483_v14 = vpop.f32.mrb[5].mxu1  ;;  %v920_v15 = vsel %vm919_vm4, %v912_v13, -inf }
 0x329   : > { %921 = vmax.xlane.f32.xlu0 %v920_v15  ;;  %v915_v16 = vpop.f32.mrb[6].mxu1  ;;  %v1425_v14 = vld [vmem:[#allocation2 + $0x20] sm:$0xf0] }
 0x32a   : > { %v2484_v17 = vpop.f32.mrb[7].mxu1  ;;  %v923_v18 = vsel %vm919_vm4, %v915_v16, -inf }
 0x32b   : > { %924 = vmax.xlane.f32.xlu1 %v923_v18 }
 0x33c   : > { %822 = vrot.lane.b32.xlu1 %v820_v19, %s3046_s17 }
 0x33f   : > { %840 = vrot.lane.b32.xlu0 %v838_v20, %s3047_s23  ;;  %v1260_v20 = vld [vmem:[#allocation2 + $0x18] sm:$0xf] }
 0x340   : > { %858 = vrot.lane.b32.xlu1 %v856_v22, %s3045_s19  ;;  %v1453_v22 = vld [vmem:[#allocation2 + $0x20] sm:$0xf0] }
 0x343   : > { %1045 = vrot.lane.b32.xlu0 %v1043_v23, %s3047_s23  ;;  %v1429_v23 = vld [vmem:[#allocation2 + $0x18] sm:$0xf0] }
 0x344   : > { %1027 = vrot.lane.b32.xlu1 %v1025_v24, %s3046_s17  ;;  %v1465_v24 = vld [vmem:[#allocation2 + $0x18] sm:$0xf0] }
 0x347   : > { %1021 = vrot.lane.b32.xlu0 %v1019_v25, %s3046_s17 }
 0x348   : > { %1063 = vrot.lane.b32.xlu1 %v1061_v26, %s3045_s19 }
 0x34b   : > { %1057 = vrot.lane.b32.xlu0 %v1055_v27, %s3045_s19 }
 0x34c   : > { %1039 = vrot.lane.b32.xlu1 %v1037_v30, %s3047_s23 }
 0x34f   : > { %1250 = vrot.lane.b32.xlu0 %v1248_v32, %s3047_s23 }
 0x350   : > { %1232 = vrot.lane.b32.xlu1 %v1230_v33, %s3046_s17 }
 0x353   : > { %1226 = vrot.lane.b32.xlu0 %v1224_v34, %s3046_s17 }
 0x354   : > { %1268 = vrot.lane.b32.xlu1 %v1266_v35, %s3045_s19 }
 0x358   : > { %1244 = vrot.lane.b32.xlu1 %v1242_v36, %s3047_s23 }
 0x35c   : > { %1437 = vrot.lane.b32.xlu1 %v1435_v37, %s3046_s17 }
 0x360   : > { %1473 = vrot.lane.b32.xlu1 %v1471_v38, %s3045_s19 }
 0x364   : > { %1449 = vrot.lane.b32.xlu1 %v1447_v39, %s3047_s23 }
 0x3b6   : > { %v922_v40 = vpop.xlane.xlu0 %921 }
 0x3b7   : > { %v926_v41 = vsub.f32 %v912_v13, %v922_v40 }
 0x3b8   : > { %v925_v42 = vpop.xlane.xlu1 %924 }
 0x3b9   : > { %v928_v43 = vmul.f32 1.442695, %v926_v41  ;;  %v927_v44 = vsub.f32 %v915_v16, %v925_v42 }
 0x3ba   : > { %v841_v45 = vpop.permute.xlu0 %840 }
 0x3bb   : > { %2738 = vpow2.f32 %v928_v43  ;;  %v930_v46 = vmul.f32 1.442695, %v927_v44  ;;  %843 = vst.msk [vmem:[#allocation5 + $0x8] sm:$0xf] %vm802_vm0, %v841_v45 }
 0x3bc   : > { %v823_v47 = vpop.permute.xlu1 %822 }
 0x3bd   : > { %2740 = vpow2.f32 %v930_v46  ;;  %825 = vst.msk [vmem:[#allocation5 + $0x4] sm:$0xf] %vm802_vm0, %v823_v47 }
 0x3be   : > { %v1046_v48 = vpop.permute.xlu0 %1045 }
 0x3bf   : > { %1048 = vst.msk [vmem:[#allocation4 + $0x4] sm:$0xf0] %vm1013_vm2, %v1046_v48 }
 0x3c0   : > { %v859_v49 = vpop.permute.xlu1 %858 }
 0x3c1   : > { %861 = vst.msk [vmem:[#allocation5 + $0xc] sm:$0xf] %vm802_vm0, %v859_v49 }
 0x3c2   : > { %v1022_v50 = vpop.permute.xlu0 %1021 }
 0x3c3   : > { %1024 = vst.msk [vmem:[#allocation3] sm:$0xf0] %vm1013_vm2, %v1022_v50 }
 0x3c4   : > { %v1028_v52 = vpop.permute.xlu1 %1027  ;;  %v868_v53 = vld [vmem:[#allocation5] sm:$0xff] }
 0x3c5   : > { %v3460_v54 = vpop.eup %2738  ;;  %1030 = vst.msk [vmem:[#allocation4] sm:$0xf0] %vm1013_vm2, %v1028_v52  ;;  %1018 = vst.msk [vmem:[#allocation5 - $0x4] sm:$0xf0] %vm1013_vm2, %v1017_v51 }
 0x3c6   : > { %v1058_v55 = vpop.permute.xlu0 %1057  ;;  %v932_v56 = vsel %vm919_vm4, %v3460_v54, 0.0 }
 0x3c7   : > { %v3466_v57 = vpop.eup %2740  ;;  %1060 = vst.msk [vmem:[#allocation3 + $0x8] sm:$0xf0] %vm1013_vm2, %v1058_v55  ;;  %933 = vadd.xlane.f32.xlu0 %v932_v56 }
 0x3c8   : > { %v1064_v58 = vpop.permute.xlu1 %1063  ;;  %v869_v59 = vld [vmem:[#allocation5 + $0x8] sm:$0xff]  ;;  %v935_v63 = vsel %vm919_vm4, %v3466_v57, 0.0 }
 0x3c9   : > { %1066 = vst.msk [vmem:[#allocation4 + $0x8] sm:$0xf0] %vm1013_vm2, %v1064_v58  ;;  %v870_v60 = vpack.c.bf16 %v869_v59, %v868_v53 }
 0x3ca   : > { %v1251_v62 = vpop.permute.xlu0 %1250  ;;  %v3472_v1 = vld [vmem:[#allocation3] sm:$0xff] }
 0x3cb   : > { %936 = vadd.xlane.f32.xlu0 %v935_v63  ;;  %2486 = vmatpush3.bf16.msra.mxu1 %v870_v60  ;;  %1219 = vst.msk [vmem:[#allocation3] sm:$0xf] %vm802_vm0, %v1218_v61 }
 0x3cc   : > { %v1040_v3 = vpop.permute.xlu1 %1039  ;;  %v1076_v4 = vld [vmem:[#allocation4] sm:$0xff]  ;;  %2491 = vmatprep.subr.bf16.mxu1 %v3043_v21 }
 0x3cd   : > { %1042 = vst.msk [vmem:[#allocation3 + $0x4] sm:$0xf0] %vm1013_vm2, %v1040_v3 }
 0x3ce   : > { %1221 = vst.msk [vmem:[#allocation4] sm:$0xf] %vm802_vm0, %v1220_v2  ;;  %v1227_v5 = vpop.permute.xlu0 %1226 }
 0x3cf   : > { %1229 = vst.msk [vmem:[#allocation3 + $0x4] sm:$0xf] %vm802_vm0, %v1227_v5 }
 0x3d0   : > { %v1077_v6 = vld [vmem:[#allocation4 + $0x8] sm:$0xff]  ;;  %v1233_v7 = vpop.permute.xlu1 %1232 }
 0x3d1   : > { %1253 = vst.msk [vmem:[#allocation4 + $0x8] sm:$0xf] %vm802_vm0, %v1251_v62  ;;  %1235 = vst.msk [vmem:[#allocation4 + $0x4] sm:$0xf] %vm802_vm0, %v1233_v7  ;;  %v1078_v39 = vpack.c.bf16 %v1077_v6, %v1076_v4 }
 0x3d3   : > { %v1086_v43 = vsel %vm871_vm3, %v1078_v39, 0  ;;  %v1236_v39 = vld [vmem:[#allocation2 + $0x28] sm:$0xf] }
 0x3d4   : > { %v1269_v8 = vpop.permute.xlu1 %1268  ;;  %v1074_v11 = vld [vmem:[#allocation3 + $0x8] sm:$0xff] }
 0x3d5   : > { %1271 = vst.msk [vmem:[#allocation4 + $0xc] sm:$0xf] %vm802_vm0, %v1269_v8  ;;  %v1075_v48 = vpack.c.bf16 %v1074_v11, %v3472_v1 }
 0x3d6   : > { %v1278_v10 = vld [vmem:[#allocation3] sm:$0xff] }
 0x3d7   : > { %1424 = vst.msk [vmem:[#allocation3 - $0x4] sm:$0xf0] %vm1013_vm2, %v1423_v9 }
 0x3d8   : > { %v1245_v12 = vpop.permute.xlu1 %1244  ;;  %v1281_v13 = vld [vmem:[#allocation4] sm:$0xff] }
 0x3d9   : > { %1247 = vst.msk [vmem:[#allocation3 + $0x8] sm:$0xf] %vm802_vm0, %v1245_v12 }
 0x3da   : > { %1426 = vst.msk [vmem:[#allocation4 - $0x4] sm:$0xf0] %vm1013_vm2, %v1425_v14 }
 0x3dc   : > { %v1438_v15 = vpop.permute.xlu1 %1437  ;;  %v1282_v16 = vld [vmem:[#allocation4 + $0x8] sm:$0xff] }
 0x3dd   : > { %v1283_v17 = vpack.c.bf16 %v1282_v16, %v1281_v13  ;;  %1440 = vst.msk [vmem:[#allocation4] sm:$0xf0] %vm1013_vm2, %v1438_v15 }
 0x3df   : > { %v1291_v18 = vsel %vm871_vm3, %v1283_v17, 0 }
 0x3e0   : > { %2504 = vmatpush3.bf16.xpose.msra.mxu0 %v1291_v18  ;;  %v1474_v19 = vpop.permute.xlu1 %1473 }
 0x3e1   : > { %1476 = vst.msk [vmem:[#allocation4 + $0x8] sm:$0xf0] %vm1013_vm2, %v1474_v19  ;;  %1262 = vrot.lane.b32.xlu0 %v1260_v20, %s3045_s19  ;;  %2515 = vmatprep.subr.bf16.mxu0 %v3043_v21 }
 0x3e4   : > { %v1450_v34 = vpop.permute.xlu1 %1449  ;;  %v1486_v44 = vld [vmem:[#allocation4] sm:$0xff] }
 0x3e5   : > { %1455 = vrot.lane.b32.xlu0 %v1453_v22, %s3047_s23 }
 0x3e9   : > { %1431 = vrot.lane.b32.xlu0 %v1429_v23, %s3046_s17  ;;  %v1049_v23 = vld [vmem:[#allocation2 + $0x10] sm:$0xf0] }
 0x3ed   : > { %1467 = vrot.lane.b32.xlu0 %v1465_v24, %s3045_s19  ;;  %v1031_v24 = vld [vmem:[#allocation2 + $0x10] sm:$0xf0] }
 0x454   : > { %v934_v25 = vpop.xlane.xlu0 %933 }
 0x455   : > { %2742 = vrcp.f32 %v934_v25  ;;  %v1067_v25 = vld [vmem:[#allocation2 + $0x10] sm:$0xf0] }
 0x458   : > { %v937_v26 = vpop.xlane.xlu0 %936 }
 0x459   : > { %2744 = vrcp.f32 %v937_v26 }
 0x45c   : > { %v1263_v27 = vpop.permute.xlu0 %1262 }
 0x45d   : > { %1265 = vst.msk [vmem:[#allocation3 + $0xc] sm:$0xf] %vm802_vm0, %v1263_v27 }
 0x45f   : > { %v2743_v32 = vpop.eup %2742 }
 0x460   : > { %v1456_v30 = vpop.permute.xlu0 %1455  ;;  %v940_v35 = vmul.f32 %v2743_v32, %v3460_v54 }
 0x461   : > { %1458 = vst.msk [vmem:[#allocation4 + $0x4] sm:$0xf0] %vm1013_vm2, %v1456_v30 }
 0x463   : > { %v2745_v33 = vpop.eup %2744 }
 0x464   : > { %v941_v36 = vmul.f32 %v2745_v33, %v3466_v57  ;;  %v1432_v37 = vpop.permute.xlu0 %1431  ;;  %v1279_v38 = vld [vmem:[#allocation3 + $0x8] sm:$0xff] }
 0x465   : > { %1434 = vst.msk [vmem:[#allocation3] sm:$0xf0] %vm1013_vm2, %v1432_v37  ;;  %v1280_v40 = vpack.c.bf16 %v1279_v38, %v1278_v10  ;;  %1452 = vst.msk [vmem:[#allocation3 + $0x4] sm:$0xf0] %vm1013_vm2, %v1450_v34 }
 0x466   : > { %v942_v41 = vpack.c.bf16 %v941_v36, %v940_v35 }
 0x467   : > { %2506 = vmatmul.mubr.msk.bf16.vlgmr.msra.gmra.mrb[4].mxu0 %vm871_vm3, %v1280_v40  ;;  %v1254_v40 = vld [vmem:[#allocation2 + $0x28] sm:$0xf] }
 0x468   : > { %v1468_v42 = vpop.permute.xlu0 %1467  ;;  %2488 = vmatmul.mubr.msk.bf16.vlgmr.msra.gmra.mrb[8].mxu1 %vm919_vm4, %v942_v41  ;;  %v1487_v45 = vld [vmem:[#allocation4 + $0x8] sm:$0xff]  ;;  %2517 = vmatprep.mubr.msk.bf16.mxu0 %vm3044_vm1, %v3043_v21 }
 0x469   : > { %1470 = vst.msk [vmem:[#allocation3 + $0x8] sm:$0xf0] %vm1013_vm2, %v1468_v42  ;;  %2492 = vmatpush3.bf16.xpose.msra.mxu1 %v1086_v43  ;;  %v1488_v46 = vpack.c.bf16 %v1487_v45, %v1486_v44  ;;  %2493 = vmatprep.mubr.msk.bf16.mxu1 %vm3044_vm1, %v3043_v21  ;;  %v1441_v41 = vld [vmem:[#allocation2 + $0x28] sm:$0xf0] }
 0x46a   : > { %2497 = vmatprep.subr.bf16.mxu1 %v3043_v21 }
 0x46b   : > { %v1496_v47 = vsel %vm871_vm3, %v1488_v46, 0 }
 0x46c   : > { %2516 = vmatpush3.bf16.xpose.msra.mxu0 %v1496_v47  ;;  %v1483_v49 = vld [vmem:[#allocation3] sm:$0xff] }
 0x46d   : > { %2527 = vmatprep.subr.bf16.mxu0 %v3043_v21 }
 0x470   : > { %2494 = vmatmul.mubr.msk.bf16.vlgmr.msra.gmra.mrb[12].mxu1 %vm871_vm3, %v1075_v48  ;;  %v1484_v50 = vld [vmem:[#allocation3 + $0x8] sm:$0xff] }
 0x471   : > { %v1485_v51 = vpack.c.bf16 %v1484_v50, %v1483_v49  ;;  %2499 = vmatprep.mubr.msk.bf16.mxu1 %vm3044_vm1, %v3043_v21 }
 0x473   : > { %2518 = vmatmul.mubr.msk.bf16.vlgmr.msra.gmra.mrb[8].mxu0 %vm871_vm3, %v1485_v51 }
 0x474   : > { %2543 = vmatprep.mubr.msk.bf16.mxu0 %vm3044_vm1, %v3043_v21 }
 0x53a   : > { %v1327_v52 = vpop.f32.mrb[4].mxu0 }
 0x53b   : > { %v980_v53 = vpop.f32.mrb[8].mxu1  ;;  %v2507_v54 = vpop.f32.mrb[5].mxu0  ;;  %v1334_v55 = vsel %vm919_vm4, %v1327_v52, -inf }
 0x53c   : > { %987 = vst.msk [vmem:[#allocation6] sm:$0xff] %vm871_vm3, %v980_v53  ;;  %1335 = vmax.xlane.f32.xlu0 %v1334_v55  ;;  %v2489_v56 = vpop.f32.mrb[9].mxu1  ;;  %v1330_v57 = vpop.f32.mrb[6].mxu0 }
 0x53d   : > { %v983_v58 = vpop.f32.mrb[10].mxu1  ;;  %v2508_v59 = vpop.f32.mrb[7].mxu0  ;;  %v1337_v60 = vsel %vm919_vm4, %v1330_v57, -inf }
 0x53e   : > { %988 = vst.msk [vmem:[#allocation6 + $0x8] sm:$0xff] %vm871_vm3, %v983_v58  ;;  %1338 = vmax.xlane.f32.xlu1 %v1337_v60  ;;  %v2490_v61 = vpop.f32.mrb[11].mxu1  ;;  %v1222_v58 = vld [vmem:[#allocation2 + $0x28] sm:$0xf] }
 0x543   : > { %v3521_v62 = vpop.f32.mrb[12].mxu1  ;;  %v989_v63 = vld [vmem:[#allocation6] sm:$0xf] }
 0x544   : > { %v2495_v1 = vpop.f32.mrb[13].mxu1  ;;  %990 = vst.msk [vmem:[#allocation7] sm:$0xf] %vm802_vm0, %v989_v63  ;;  %v1129_v22 = vsel %vm919_vm4, %v3521_v62, -inf }
 0x545   : > { %v1125_v2 = vpop.f32.mrb[14].mxu1 }
 0x546   : > { %v2496_v3 = vpop.f32.mrb[15].mxu1  ;;  %v1532_v4 = vpop.f32.mrb[8].mxu0  ;;  %v1132_v20 = vsel %vm919_vm4, %v1125_v2, -inf }
 0x547   : > { %v2519_v5 = vpop.f32.mrb[9].mxu0  ;;  %v1539_v6 = vsel %vm919_vm4, %v1532_v4, -inf  ;;  %v1477_v3 = vld [vmem:[#allocation2 + $0x28] sm:$0xf0] }
 0x548   : > { %1540 = vmax.xlane.f32.xlu0 %v1539_v6  ;;  %v1535_v7 = vpop.f32.mrb[10].mxu0  ;;  %v1459_v5 = vld [vmem:[#allocation2 + $0x28] sm:$0xf0]  ;;  %v991_v6 = vld [vmem:[#allocation6 + $0x4] sm:$0xf] }
 0x549   : > { %v2520_v8 = vpop.f32.mrb[11].mxu0  ;;  %v1542_v9 = vsel %vm919_vm4, %v1535_v7, -inf }
 0x54a   : > { %1543 = vmax.xlane.f32.xlu1 %v1542_v9  ;;  %v1005_v9 = vld [vmem:[#allocation6 + $0xc] sm:$0xf] }
 0x5c9   : > { %v1336_v10 = vpop.xlane.xlu0 %1335 }
 0x5ca   : > { %v1340_v11 = vsub.f32 %v1327_v52, %v1336_v10 }
 0x5cb   : > { %v1339_v12 = vpop.xlane.xlu1 %1338 }
 0x5cc   : > { %v1342_v13 = vmul.f32 1.442695, %v1340_v11  ;;  %v1341_v14 = vsub.f32 %v1330_v57, %v1339_v12 }
 0x5ce   : > { %2746 = vpow2.f32 %v1342_v13  ;;  %v1344_v15 = vmul.f32 1.442695, %v1341_v14  ;;  %v1427_v14 = vld [vmem:[#allocation2 + $0x28] sm:$0xf0] }
 0x5d0   : > { %2748 = vpow2.f32 %v1344_v15 }
 0x5d5   : > { %v1541_v26 = vpop.xlane.xlu0 %1540 }
 0x5d6   : > { %v1545_v27 = vsub.f32 %v1532_v4, %v1541_v26  ;;  %v1272_v4 = vld [vmem:[#allocation2 + $0x28] sm:$0xf] }
 0x5d7   : > { %v1544_v30 = vpop.xlane.xlu1 %1543 }
 0x5d8   : > { %v2747_v16 = vpop.eup %2746  ;;  %v1547_v32 = vmul.f32 1.442695, %v1545_v27  ;;  %v1546_v33 = vsub.f32 %v1535_v7, %v1544_v30  ;;  %v998_v7 = vld [vmem:[#allocation6 + $0x8] sm:$0xf] }
 0x5d9   : > { %v1346_v17 = vsel %vm919_vm4, %v2747_v16, 0.0 }
 0x5da   : > { %v2749_v18 = vpop.eup %2748  ;;  %1347 = vadd.xlane.f32.xlu0 %v1346_v17  ;;  %2750 = vpow2.f32 %v1547_v32  ;;  %v1549_v34 = vmul.f32 1.442695, %v1546_v33 }
 0x5db   : > { %v1349_v19 = vsel %vm919_vm4, %v2749_v18, 0.0 }
 0x5dc   : > { %1350 = vadd.xlane.f32.xlu1 %v1349_v19  ;;  %2752 = vpow2.f32 %v1549_v34 }
 0x5de   : > { %1133 = vmax.xlane.f32.xlu0 %v1132_v20 }
 0x5e0   : > { %1130 = vmax.xlane.f32.xlu1 %v1129_v22 }
 0x5e4   : > { %v3534_v35 = vpop.eup %2750 }
 0x5e5   : > { %v1551_v36 = vsel %vm919_vm4, %v3534_v35, 0.0 }
 0x5e6   : > { %v3538_v37 = vpop.eup %2752 }
 0x5e7   : > { %v1554_v38 = vsel %vm919_vm4, %v3538_v37, 0.0 }
 0x5f1   : > { %1051 = vrot.lane.b32.xlu1 %v1049_v23, %s3047_s23 }
 0x5f4   : > { %1033 = vrot.lane.b32.xlu0 %v1031_v24, %s3046_s17 }
 0x5f5   : > { %1069 = vrot.lane.b32.xlu1 %v1067_v25, %s3045_s19 }
 0x613   : > { %1552 = vadd.xlane.f32.xlu0 %v1551_v36 }
 0x619   : > { %1555 = vadd.xlane.f32.xlu1 %v1554_v38 }
 0x629   : > { %1238 = vrot.lane.b32.xlu0 %v1236_v39, %s3046_s17 }
 0x62a   : > { %1256 = vrot.lane.b32.xlu1 %v1254_v40, %s3047_s23 }
 0x62e   : > { %1443 = vrot.lane.b32.xlu1 %v1441_v41, %s3046_s17 }
 0x667   : > { %v1348_v42 = vpop.xlane.xlu0 %1347 }
 0x668   : > { %2754 = vrcp.f32 %v1348_v42 }
 0x669   : > { %v1351_v43 = vpop.xlane.xlu1 %1350 }
 0x66a   : > { %2756 = vrcp.f32 %v1351_v43  ;;  %v2690_v43 = vld [vmem:[#allocation13] sm:$0xff]  }
 0x66b   : > { %v1134_v44 = vpop.xlane.xlu0 %1133  ;;  %2528 = vmatpush3.bf16.msra.mxu0 %v2690_v43 }
 0x66c   : > { %v1136_v45 = vsub.f32 %v1125_v2, %v1134_v44  ;;  %2529 = vmatprep.subr.bf16.mxu0 %v3043_v21 }
 0x66d   : > { %v1131_v46 = vpop.xlane.xlu1 %1130 }
 0x66e   : > { %v1139_v47 = vmul.f32 1.442695, %v1136_v45  ;;  %v1135_v48 = vsub.f32 %v3521_v62, %v1131_v46  ;;  %v2691_v45 = vld [vmem:[#allocation13 + $0x8] sm:$0xff]  }
 0x66f   : > { %v1034_v49 = vpop.permute.xlu0 %1033  ;;  %2530 = vmatpush3.bf16.msra.mxu0 %v2691_v45 }
 0x670   : > { %2758 = vpow2.f32 %v1139_v47  ;;  %v1137_v50 = vmul.f32 1.442695, %v1135_v48  ;;  %1036 = vst.msk [vmem:[#allocation5] sm:$0xf0] %vm1013_vm2, %v1034_v49  ;;  %2531 = vmatprep.subr.bf16.mxu0 %v3043_v21  ;;  %v2692_v49 = vld [vmem:[#allocation13 + $0x10] sm:$0xff]  }
 0x671   : > { %v1052_v51 = vpop.permute.xlu1 %1051 }
 0x672   : > { %v2755_v52 = vpop.eup %2754  ;;  %2760 = vpow2.f32 %v1137_v50  ;;  %1054 = vst.msk [vmem:[#allocation5 + $0x4] sm:$0xf0] %vm1013_vm2, %v1052_v51 }
 0x673   : > { %v3548_v54 = vmul.f32 %v2755_v52, %v2747_v16  ;;  %2532 = vmatpush3.bf16.msra.mxu0 %v2692_v49  ;;  %v2693_v52 = vld [vmem:[#allocation13 + $0x18] sm:$0xff]   ;;  %v2706_v49 = vld [vmem:[#allocation14 + $0x24] ss:$8 sps:$4 sm:$0xff]  }
 0x674   : > { %v2757_v53 = vpop.eup %2756  ;;  %2533 = vmatprep.subr.bf16.mxu0 %v3043_v21 }
 0x675   : > { %v3550_v55 = vmul.f32 %v2757_v53, %v2749_v18  ;;  %v1070_v56 = vpop.permute.xlu1 %1069 }
 0x676   : > { %1072 = vst.msk [vmem:[#allocation5 + $0x8] sm:$0xf0] %vm1013_vm2, %v1070_v56 }
 0x677   : > { %v1079_v57 = vld [vmem:[#allocation5] sm:$0xff]  ;;  %v1356_v59 = vpack.c.bf16 %v3550_v55, %v3548_v54  ;;  %2534 = vmatpush3.bf16.msra.mxu0 %v2693_v52  ;;  %v2712_v52 = vld [vmem:[#allocation14 + $0x44] ss:$8 sps:$4 sm:$0xff]  }
 0x678   : > { %1223 = vst.msk [vmem:[#allocation5] sm:$0xf] %vm802_vm0, %v1222_v58  ;;  %2535 = vmatprep.subr.bf16.mxu0 %v3043_v21  ;;  %v2694_v58 = vld [vmem:[#allocation13 + $0x20] sm:$0xff]  }
 0x67a   : > { %v2759_v60 = vpop.eup %2758 }
 0x67b   : > { %v1144_v61 = vsel %vm919_vm4, %v2759_v60, 0.0  ;;  %2536 = vmatpush3.bf16.msra.mxu0 %v2694_v58  ;;  %v2721_v58 = vld [vmem:[#allocation14 + $0x74] ss:$8 sps:$4 sm:$0xff]  }
 0x67c   : > { %v2761_v62 = vpop.eup %2760  ;;  %1145 = vadd.xlane.f32.xlu1 %v1144_v61  ;;  %2537 = vmatprep.subr.bf16.mxu0 %v3043_v21 }
 0x67d   : > { %v1141_v63 = vsel %vm919_vm4, %v2761_v62, 0.0  ;;  %v1080_v1 = vld [vmem:[#allocation5 + $0x8] sm:$0xff] }
 0x67e   : > { %1142 = vadd.xlane.f32.xlu0 %v1141_v63  ;;  %v1081_v2 = vpack.c.bf16 %v1080_v1, %v1079_v57 }
 0x680   : > { %2498 = vmatpush3.bf16.msra.mxu1 %v1081_v2 }
 0x681   : > { %2509 = vmatprep.subr.bf16.mxu1 %v3043_v21 }
 0x68d   : > { %1479 = vrot.lane.b32.xlu1 %v1477_v3, %s3045_s19 }
 0x694   : > { %1274 = vrot.lane.b32.xlu0 %v1272_v4, %s3045_s19 }
 0x698   : > { %1461 = vrot.lane.b32.xlu0 %v1459_v5, %s3047_s23  ;;  %v2696_v5 = vld [vmem:[#allocation13 + $0x30] sm:$0xff]  }
 0x69c   : > { %993 = vrot.lane.b32.xlu0 %v991_v6, %s3045_s19  ;;  %v2697_v6 = vld [vmem:[#allocation13 + $0x38] sm:$0xff]  }
 0x6a0   : > { %1000 = vrot.lane.b32.xlu0 %v998_v7, %s3047_s23  ;;  %v1553_v8 = vpop.xlane.xlu0 %1552 }
 0x6a1   : > { %2762 = vrcp.f32 %v1553_v8 }
 0x6a4   : > { %1007 = vrot.lane.b32.xlu0 %v1005_v9, %s3046_s17  ;;  %v1239_v10 = vpop.permute.xlu0 %1238 }
 0x6a5   : > { %1241 = vst.msk [vmem:[#allocation5 + $0x4] sm:$0xf] %vm802_vm0, %v1239_v10 }
 0x6a6   : > { %v1556_v11 = vpop.xlane.xlu1 %1555 }
 0x6a7   : > { %2764 = vrcp.f32 %v1556_v11 }
 0x6aa   : > { %v1257_v12 = vpop.permute.xlu1 %1256 }
 0x6ab   : > { %1259 = vst.msk [vmem:[#allocation5 + $0x8] sm:$0xf] %vm802_vm0, %v1257_v12  ;;  %v2763_v16 = vpop.eup %2762 }
 0x6ac   : > { %v1284_v13 = vld [vmem:[#allocation5] sm:$0xff]  ;;  %v1559_v18 = vmul.f32 %v2763_v16, %v3534_v35 }
 0x6ad   : > { %1428 = vst.msk [vmem:[#allocation5 - $0x4] sm:$0xf0] %vm1013_vm2, %v1427_v14 }
 0x6ae   : > { %v1444_v15 = vpop.permute.xlu1 %1443 }
 0x6af   : > { %1446 = vst.msk [vmem:[#allocation5] sm:$0xf0] %vm1013_vm2, %v1444_v15 }
 0x6b1   : > { %v2765_v17 = vpop.eup %2764 }
 0x6b2   : > { %v1560_v19 = vmul.f32 %v2765_v17, %v3538_v37 }
 0x6b4   : > { %v1561_v20 = vpack.c.bf16 %v1560_v19, %v1559_v18 }
 0x6b6   : > { %v1489_v40 = vld [vmem:[#allocation5] sm:$0xff] }
 0x709   : > { %v1146_v22 = vpop.xlane.xlu1 %1145 }
 0x70a   : > { %2766 = vrcp.f32 %v1146_v22 }
 0x70b   : > { %v1143_v23 = vpop.xlane.xlu0 %1142 }
 0x70c   : > { %2768 = vrcp.f32 %v1143_v23  ;;  %v2350_v23 = vld [vmem:[%s3708_s4] ss:$0 sm:$0xff] }
 0x70d   : > { %v1480_v33 = vpop.permute.xlu1 %1479 }
 0x70f   : > { %v1275_v24 = vpop.permute.xlu0 %1274 }
 0x710   : > { %1277 = vst.msk [vmem:[#allocation5 + $0xc] sm:$0xf] %vm802_vm0, %v1275_v24 }
 0x713   : > { %v1462_v25 = vpop.permute.xlu0 %1461 }
 0x714   : > { %v2767_v26 = vpop.eup %2766 }
 0x715   : > { %v1150_v30 = vmul.f32 %v2767_v26, %v2759_v60 }
 0x716   : > { %v2769_v27 = vpop.eup %2768 }
 0x717   : > { %v1149_v32 = vmul.f32 %v2769_v27, %v2761_v62  ;;  %v994_v34 = vpop.permute.xlu0 %993  ;;  %v1285_v36 = vld [vmem:[#allocation5 + $0x8] sm:$0xff]  ;;  %v2695_v62 = vld [vmem:[#allocation13 + $0x28] sm:$0xff]  }
 0x718   : > { %997 = vst.msk [vmem:[#allocation7] sm:$0xf] %vm996_vm5, %v994_v34  ;;  %v1286_v35 = vpack.c.bf16 %v1285_v36, %v1284_v13  ;;  %2538 = vmatpush3.bf16.msra.mxu0 %v2695_v62  ;;  %v2779_v36 = vld [vmem:[%s3360_s11 + $0x8] sm:$0xff] }
 0x719   : > { %1464 = vst.msk [vmem:[#allocation5 + $0x4] sm:$0xf0] %vm1013_vm2, %v1462_v25  ;;  %1482 = vst.msk [vmem:[#allocation5 + $0x8] sm:$0xf0] %vm1013_vm2, %v1480_v33  ;;  %v1151_v37 = vpack.c.bf16 %v1150_v30, %v1149_v32  ;;  %2539 = vmatprep.subr.bf16.mxu0 %v3043_v21  ;;  %v2778_v33 = vld [vmem:[%s3360_s11] sm:$0xff]  ;;  %v2724_v62 = vld [vmem:[#allocation16 + $0x48] sm:$0xff]  }
 0x71b   : > { %2500 = vmatmul.mubr.msk.bf16.vlgmr.msra.gmra.mrb[16].mxu1 %vm919_vm4, %v1151_v37  ;;  %v1001_v38 = vpop.permute.xlu0 %1000  ;;  %v2698_v37 = vld [vmem:[#allocation14] ss:$8 sps:$4 sm:$0xff]  }
 0x71c   : > { %2510 = vmatpush3.bf16.msra.mxu1 %v1286_v35  ;;  %1004 = vst.msk [vmem:[#allocation7] sm:$0xf] %vm1003_vm6, %v1001_v38  ;;  %2511 = vmatprep.mubr.msk.bf16.mxu1 %vm3044_vm1, %v3043_v21  ;;  %v2700_v38 = vld [vmem:[#allocation14 + $0x4] ss:$8 sps:$4 sm:$0xff]  }
 0x71d   : > { %2521 = vmatprep.subr.bf16.mxu1 %v3043_v21  ;;  %2540 = vmatpush3.bf16.msra.mxu0 %v2696_v5  ;;  %v2730_v5 = vld [vmem:[#allocation16 + $0x60] sm:$0xff]  }
 0x71e   : > { %2541 = vmatprep.subr.bf16.mxu0 %v3043_v21 }
 0x71f   : > { %v1008_v39 = vpop.permute.xlu0 %1007 }
 0x720   : > { %v1490_v41 = vld [vmem:[#allocation5 + $0x8] sm:$0xff]  ;;  %1011 = vst.msk [vmem:[#allocation7] sm:$0xf] %vm1010_vm7, %v1008_v39 }
 0x721   : > { %v1491_v42 = vpack.c.bf16 %v1490_v41, %v1489_v40  ;;  %2542 = vmatpush3.bf16.msra.mxu0 %v2697_v6  ;;  %v2703_v39 = vld [vmem:[#allocation14 + $0x14] ss:$8 sps:$4 sm:$0xff]   ;;  %v2701_v40 = vld [vmem:[#allocation14 + $0x10] ss:$8 sps:$4 sm:$0xff]   ;;  %v2731_v6 = vld [vmem:[#allocation16 + $0x20] sm:$0xff]  }
 0x723   : > { %2512 = vmatmul.mubr.msk.bf16.vlgmr.msra.gmra.mrb[20].mxu1 %vm919_vm4, %v1356_v59 }
 0x724   : > { %2522 = vmatpush3.bf16.msra.mxu1 %v1491_v42  ;;  %2523 = vmatprep.mubr.msk.bf16.mxu1 %vm3044_vm1, %v3043_v21 }
 0x725   : > { %1895 = vmatprep.subr.bf16.mxu1 %v2700_v38 }
 0x72b   : > { %2524 = vmatmul.mubr.msk.bf16.vlgmr.msra.gmra.mrb[24].mxu1 %vm919_vm4, %v1561_v20 }
 0x72c   : > { %1927 = vmatprep.mubr.bf16.mxu1 %v3042_v0  ;;  %1896 = vmatpush1.bf16.msra.mxu1 %v2698_v37 }
 0x72d   : > { %1897 = vmatprep.subr.bf16.mxu1 %v2703_v39 }
 0x730   : > { %1898 = vmatpush1.bf16.msra.mxu1 %v2701_v40 }
 0x731   : > { %1899 = vmatprep.subr.bf16.mxu1 %v2706_v49 }
 0x7ee   : > { %v1189_v44 = vpop.f32.mrb[16].mxu1 }
 0x7ef   : > { %1196 = vst.msk [vmem:[#allocation6] sm:$0xff] %vm871_vm3, %v1189_v44  ;;  %v2501_v46 = vpop.f32.mrb[17].mxu1 }
 0x7f0   : > { %v1192_v47 = vpop.f32.mrb[18].mxu1 }
 0x7f1   : > { %1197 = vst.msk [vmem:[#allocation6 + $0x8] sm:$0xff] %vm871_vm3, %v1192_v47  ;;  %v2502_v48 = vpop.f32.mrb[19].mxu1 }
 0x7f6   : > { %v1394_v0 = vpop.f32.mrb[20].mxu1  ;;  %v1200_v50 = vld [vmem:[#allocation6 + $0x4] sm:$0xf]  ;;  %v1198_v51 = vld [vmem:[#allocation6] sm:$0xf] }
 0x7f7   : > { %1202 = vrot.lane.b32.xlu1 %v1200_v50, %s3045_s19  ;;  %1401 = vst.msk [vmem:[#allocation6] sm:$0xff] %vm871_vm3, %v1394_v0  ;;  %v2513_v53 = vpop.f32.mrb[21].mxu1  ;;  %v2704_v0 = vld [vmem:[#allocation14 + $0x20] ss:$8 sps:$4 sm:$0xff]   ;;  %v2709_v50 = vld [vmem:[#allocation14 + $0x34] ss:$8 sps:$4 sm:$0xff]  }
 0x7f8   : > { %1199 = vst.msk [vmem:[#allocation7 + $0x4] sm:$0xf] %vm802_vm0, %v1198_v51  ;;  %v1397_v54 = vpop.f32.mrb[22].mxu1  ;;  %v1206_v55 = vld [vmem:[#allocation6 + $0x8] sm:$0xf]  ;;  %1900 = vmatpush1.bf16.msra.mxu1 %v2704_v0 }
 0x7f9   : > { %v1212_v56 = vld [vmem:[#allocation6 + $0xc] sm:$0xf]  ;;  %v2514_v57 = vpop.f32.mrb[23].mxu1  ;;  %v2707_v51 = vld [vmem:[#allocation14 + $0x30] ss:$8 sps:$4 sm:$0xff]   ;;  %1901 = vmatprep.subr.bf16.mxu1 %v2709_v50 }
 0x7fa   : > { %1402 = vst.msk [vmem:[#allocation6 + $0x8] sm:$0xff] %vm871_vm3, %v1397_v54  ;;  %v2710_v53 = vld [vmem:[#allocation14 + $0x40] ss:$8 sps:$4 sm:$0xff]   ;;  %v2713_v54 = vld [vmem:[#allocation14 + $0x50] ss:$8 sps:$4 sm:$0xff]  }
 0x7fb   : > { %1208 = vrot.lane.b32.xlu1 %v1206_v55, %s3047_s23  ;;  %v2715_v55 = vld [vmem:[#allocation14 + $0x54] ss:$8 sps:$4 sm:$0xff]   ;;  %v2716_v57 = vld [vmem:[#allocation14 + $0x60] ss:$8 sps:$4 sm:$0xff]  }
 0x7fc   : > { %1902 = vmatpush1.bf16.msra.mxu1 %v2707_v51  ;;  %v2377_v0 = vld [vmem:[#allocation17] ss:$0 sm:$0xff] }
 0x7fd   : > { %1903 = vmatprep.subr.bf16.mxu1 %v2712_v52 }
 0x7fe   : > { %v1599_v59 = vpop.f32.mrb[24].mxu1  ;;  %v1405_v60 = vld [vmem:[#allocation6 + $0x4] sm:$0xf]  ;;  %v1403_v61 = vld [vmem:[#allocation6] sm:$0xf] }
 0x7ff   : > { %1214 = vrot.lane.b32.xlu1 %v1212_v56, %s3046_s17  ;;  %1407 = vrot.lane.b32.xlu0 %v1405_v60, %s3045_s19  ;;  %1606 = vst.msk [vmem:[#allocation6] sm:$0xff] %vm871_vm3, %v1599_v59  ;;  %v2525_v63 = vpop.f32.mrb[25].mxu1  ;;  %v2718_v56 = vld [vmem:[#allocation14 + $0x64] ss:$8 sps:$4 sm:$0xff]   ;;  %v2719_v59 = vld [vmem:[#allocation14 + $0x70] ss:$8 sps:$4 sm:$0xff]  }
 0x800   : > { %1404 = vst.msk [vmem:[#allocation7 + $0x8] sm:$0xf] %vm802_vm0, %v1403_v61  ;;  %v1602_v1 = vpop.f32.mrb[26].mxu1  ;;  %1904 = vmatpush1.bf16.msra.mxu1 %v2710_v53  ;;  %v2722_v60 = vld [vmem:[#allocation16 + $0x40] sm:$0xff]   ;;  %v2725_v63 = vld [vmem:[#allocation16 + $0x8] sm:$0xff]  }
 0x801   : > { %v1411_v2 = vld [vmem:[#allocation6 + $0x8] sm:$0xf]  ;;  %v1417_v3 = vld [vmem:[#allocation6 + $0xc] sm:$0xf]  ;;  %v2526_v4 = vpop.f32.mrb[27].mxu1  ;;  %1905 = vmatprep.subr.bf16.mxu1 %v2715_v55  ;;  %v2723_v61 = vld [vmem:[#allocation16] sm:$0xff]   ;;  %2437 = vmatprep.subr.bf16.mxu0 %v2722_v60 }
 0x802   : > { %1607 = vst.msk [vmem:[#allocation6 + $0x8] sm:$0xff] %vm871_vm3, %v1602_v1  ;;  %v2726_v1 = vld [vmem:[#allocation16 + $0x50] sm:$0xff]   ;;  %v2729_v4 = vld [vmem:[#allocation16 + $0x18] sm:$0xff]  }
 0x803   : > { %1413 = vrot.lane.b32.xlu0 %v1411_v2, %s3047_s23  ;;  %v2727_v2 = vld [vmem:[#allocation16 + $0x10] sm:$0xff]  }
 0x804   : > { %1906 = vmatpush1.bf16.msra.mxu1 %v2713_v54 }
 0x805   : > { %1907 = vmatprep.subr.bf16.mxu1 %v2718_v56 }
 0x806   : > { %v1610_v7 = vld [vmem:[#allocation6 + $0x4] sm:$0xf]  ;;  %v1608_v8 = vld [vmem:[#allocation6] sm:$0xf] }
 0x807   : > { %1419 = vrot.lane.b32.xlu0 %v1417_v3, %s3046_s17  ;;  %1612 = vrot.lane.b32.xlu1 %v1610_v7, %s3045_s19  ;;  %1609 = vst.msk [vmem:[#allocation7 + $0xc] sm:$0xf] %vm802_vm0, %v1608_v8  ;;  %v2728_v3 = vld [vmem:[#allocation16 + $0x58] sm:$0xff]   ;;  %v2732_v7 = vld [vmem:[#allocation16 + $0x68] sm:$0xff]   ;;  %s2165_s19 = scalar_lea.sflag [#allocation10], %s3354_s12 }
 0x808   : > { %1908 = vmatpush1.bf16.msra.mxu1 %v2716_v57 }
 0x809   : > { %v1616_v9 = vld [vmem:[#allocation6 + $0x8] sm:$0xf]  ;;  %v1622_v10 = vld [vmem:[#allocation6 + $0xc] sm:$0xf]  ;;  %1909 = vmatprep.subr.bf16.mxu1 %v2721_v58 }
 0x80b   : > { %1618 = vrot.lane.b32.xlu1 %v1616_v9, %s3047_s23  ;;  %s3752_s23 = sld [smem:[#allocation29_spill]] }
 0x80c   : > { %1910 = vmatpush1.bf16.msra.mxu1 %v2719_v59 }
 0x80f   : > { %1624 = vrot.lane.b32.xlu1 %v1622_v10, %s3046_s17  ;;  %s2954_s17 = sshll.u32 %s3048_s22, 4  ;;  %s2955_s17 = int_to_ptr.vmem [resolvable:$false] %s2954_s17 }
 0x810   : > { %p2957_p11 = scmp.lt.s32.totalorder %s3660_s20, %s2955_s17 }
 0x869   : > { %v1203_v11 = vpop.permute.xlu1 %1202 }
 0x86a   : > { %1205 = vst.msk [vmem:[#allocation7 + $0x4] sm:$0xf] %vm996_vm5, %v1203_v11 }
 0x86d   : > { %v1209_v12 = vpop.permute.xlu1 %1208 }
 0x86e   : > { %1211 = vst.msk [vmem:[#allocation7 + $0x4] sm:$0xf] %vm1003_vm6, %v1209_v12 }
 0x871   : > { %v1215_v21 = vpop.permute.xlu1 %1214  ;;  %v1408_v13 = vpop.permute.xlu0 %1407 }
 0x872   : > { %1217 = vst.msk [vmem:[#allocation7 + $0x4] sm:$0xf] %vm1010_vm7, %v1215_v21 }
 0x873   : > { %1410 = vst.msk [vmem:[#allocation7 + $0x8] sm:$0xf] %vm996_vm5, %v1408_v13 }
 0x875   : > { %v1414_v14 = vpop.permute.xlu0 %1413 }
 0x876   : > { %1416 = vst.msk [vmem:[#allocation7 + $0x8] sm:$0xf] %vm1003_vm6, %v1414_v14 }
 0x879   : > { %v1420_v15 = vpop.permute.xlu0 %1419  ;;  %v1613_v16 = vpop.permute.xlu1 %1612  ;;  %v1628_v19 = vld [vmem:[#allocation7] sm:$0xff] }
 0x87a   : > { %1422 = vst.msk [vmem:[#allocation7 + $0x8] sm:$0xf] %vm1010_vm7, %v1420_v15  ;;  %v2359_v15 = vld [vmem:[%s3709_s5] ss:$0 sm:$0xff] }
 0x87b   : > { %1615 = vst.msk [vmem:[#allocation7 + $0xc] sm:$0xf] %vm996_vm5, %v1613_v16 }
 0x87d   : > { %v1619_v17 = vpop.permute.xlu1 %1618 }
 0x87e   : > { %1621 = vst.msk [vmem:[#allocation7 + $0xc] sm:$0xf] %vm1003_vm6, %v1619_v17 }
 0x881   : > { %v1625_v18 = vpop.permute.xlu1 %1624 }
 0x882   : > { %1627 = vst.msk [vmem:[#allocation7 + $0xc] sm:$0xf] %vm1010_vm7, %v1625_v18 }
 0x889   : > { %v1629_v20 = vld [vmem:[#allocation7 + $0x8] sm:$0xff] }
 0x88a   : > { %v1630_v22 = vpack.c.bf16 %v1629_v20, %v1628_v19  ;;  %v2360_v19 = vld [vmem:[%s3750_s13] ss:$0 sm:$0xff] }
 0x88c   : > { %2544 = vmatmul.mubr.bf16.vlgmr.msra.gmra.mrb[12].mxu0 %v1630_v22 }
 0x88d   : > { %2438 = vmatpush3.bf16.msra.mxu0 %v2723_v61 }
 0x88e   : > { %2439 = vmatprep.subr.bf16.mxu0 %v2724_v62 }
 0x891   : > { %2440 = vmatpush3.bf16.msra.mxu0 %v2725_v63 }
 0x892   : > { %2441 = vmatprep.subr.bf16.mxu0 %v2726_v1 }
 0x895   : > { %2442 = vmatpush3.bf16.msra.mxu0 %v2727_v2 }
 0x896   : > { %2443 = vmatprep.subr.bf16.mxu0 %v2728_v3 }
 0x899   : > { %2444 = vmatpush3.bf16.msra.mxu0 %v2729_v4 }
 0x89a   : > { %2445 = vmatprep.subr.bf16.mxu0 %v2730_v5 }
 0x89d   : > { %2446 = vmatpush3.bf16.msra.mxu0 %v2731_v6 }
 0x89e   : > { %2447 = vmatprep.subr.bf16.mxu0 %v2732_v7 }
 0x95f   : > { %v1736_v24 = vpop.f32.mrb[12].mxu0 }
 0x960   : > { %v1737_v25 = vadd.f32 %v2350_v23, %v1736_v24  ;;  %v2545_v26 = vpop.f32.mrb[13].mxu0 }
 0x961   : > { %v1739_v27 = vpop.f32.mrb[14].mxu0  ;;  %v2734_v26 = vld [vmem:[#allocation16 + $0x70] sm:$0xff]  }
 0x962   : > { %v1740_v30 = vadd.f32 %v2350_v23, %v1739_v27  ;;  %v2546_v32 = vpop.f32.mrb[15].mxu0  ;;  %v1743_v34 = vadd.f32 %v2778_v33, %v1737_v25  ;;  %v2733_v25 = vld [vmem:[#allocation16 + $0x28] sm:$0xff]   ;;  %v2735_v27 = vld [vmem:[#allocation16 + $0x30] sm:$0xff]   ;;  %v1803_v33 = vld [vmem:[%s3751_s6] sm:$0x3]  ;;  %s3658_s6 = scalar_lea.hbm %s3754_s15, %s2402_s30 }
 0x963   : > { %2448 = vmatpush3.bf16.msra.mxu0 %v2733_v25  ;;  %v2737_v32 = vld [vmem:[#allocation16 + $0x38] sm:$0xff]  }
 0x964   : > { %1747 = vadd.xlane.f32.xlu0 %v1743_v34  ;;  %v1744_v35 = vadd.f32 %v2779_v36, %v1740_v30  ;;  %v2736_v30 = vld [vmem:[#allocation16 + $0x78] sm:$0xff]   ;;  %2449 = vmatprep.subr.bf16.mxu0 %v2734_v26  ;;  %v1812_v36 = vrot.slane %v1803_v33, %v574_v31 }
 0x966   : > { %1749 = vadd.xlane.f32.xlu1 %v1744_v35 }
 0x967   : > { %2450 = vmatpush3.bf16.msra.mxu0 %v2735_v27 }
 0x968   : > { %2451 = vmatprep.subr.bf16.mxu0 %v2736_v30 }
 0x96b   : > { %2452 = vmatpush3.bf16.msra.mxu0 %v2737_v32 }
 0x9f1   : > { %v1748_v41 = vpop.xlane.xlu0 %1747 }
 0x9f2   : > { %v1752_v42 = vmul.f32 0.0078125, %v1748_v41 }
 0x9f3   : > { %v1750_v43 = vpop.xlane.xlu1 %1749 }
 0x9f4   : > { %v1754_v44 = vsub.f32 %v1743_v34, %v1752_v42  ;;  %v1753_v45 = vmul.f32 0.0078125, %v1750_v43  ;;  %v1808_v34 = vrot.slane %v1803_v33, %v570_v29 }
 0x9f6   : > { %v3628_v46 = vsub.f32 %v1744_v35, %v1753_v45  ;;  %v1756_v47 = vmul.f32 %v1754_v44, %v1754_v44 }
 0x9f8   : > { %1758 = vadd.xlane.f32.xlu0 %v1756_v47  ;;  %v1757_v48 = vmul.f32 %v3628_v46, %v3628_v46 }
 0x9fc   : > { %1760 = vadd.xlane.f32.xlu0 %v1757_v48 }
 0xa85   : > { %v1759_v8 = vpop.xlane.xlu0 %1758 }
 0xa86   : > { %v1762_v9 = vmul.f32 0.0078125, %v1759_v8 }
 0xa88   : > { %v1764_v10 = vadd.f32 1e-05, %v1762_v9  ;;  %v2394_v9 = vld [vmem:[%s3752_s23] ss:$0 sm:$0xff]  ;;  %s2956_s23 = scalar_lea.vmem %s2955_s17, 512 }
 0xa89   : > { %v1761_v11 = vpop.xlane.xlu0 %1760  ;;  %p2958_p12 = scmp.lt.s32.totalorder %s2956_s23, %s2950_s14 }
 0xa8a   : > { %2770 = vrsqrt.f32 %v1764_v10  ;;  %v1763_v12 = vmul.f32 0.0078125, %v1761_v11 }
 0xa8b   : > { %p2959_p13 = por %p2958_p12, %p2957_p11 }
 0xa8c   : > { %v1765_v21 = vadd.f32 1e-05, %v1763_v12  ;;  %v2395_v12 = vld [vmem:[%s3753_s21] ss:$0 sm:$0xff] }
 0xa8d   : > { %p2960_p8 = pnand %p2959_p13, %p2953_p1 }
 0xa8e   : > { %2772 = vrsqrt.f32 %v1765_v21 }
 0xa94   : > { %v2771_v13 = vpop.eup %2770 }
 0xa95   : > { %v1768_v14 = vmul.f32 %v2771_v13, %v1754_v44 }
 0xa97   : > { %v1776_v18 = vmul.f32 %v2359_v15, %v1768_v14 }
 0xa98   : > { %v2773_v16 = vpop.eup %2772 }
 0xa99   : > { %v1769_v17 = vmul.f32 %v2773_v16, %v3628_v46  ;;  %v1784_v22 = vadd.f32 %v2360_v19, %v1776_v18 }
 0xa9b   : > { %v1777_v20 = vmul.f32 %v2359_v15, %v1769_v17 }
 0xa9d   : > { %v1785_v23 = vadd.f32 %v2360_v19, %v1777_v20 }
 0xa9f   : > { %v1786_v24 = vpack.c.bf16 %v1785_v23, %v1784_v22 }
 0xaa1   : > { %1928 = vmatmul.mubr.bf16.vlgmr.msra.gmra.mrb[28].mxu1 %v1786_v24 }
 0xb74   : > { %v1929_v35 = vpop.f32.mrb[28].mxu1 }
 0xb75   : > { %v1930_v37 = vadd.f32 %v1929_v35, %v1808_v34  ;;  %v1931_v38 = vpop.f32.mrb[29].mxu1 }
 0xb76   : > { %v1932_v39 = vadd.f32 %v1931_v38, %v1812_v36  ;;  %v1933_v40 = vpop.f32.mrb[30].mxu1 }
 0xb77   : > { %v1934_v41 = vadd.f32 %v1933_v40, %v1808_v34  ;;  %v1935_v42 = vpop.f32.mrb[31].mxu1  ;;  %v1938_v44 = vmax.f32 %v1930_v37, 0.0 }
 0xb78   : > { %v1936_v43 = vadd.f32 %v1935_v42, %v1812_v36  ;;  %v1939_v46 = vmax.f32 %v1932_v39, 0.0 }
 0xb79   : > { %v1940_v45 = vmax.f32 %v1934_v41, 0.0 }
 0xb7a   : > { %v1941_v47 = vmax.f32 %v1936_v43, 0.0 }
 0xb7b   : > { %v1942_v48 = vpack.c.bf16 %v1940_v45, %v1938_v44 }
 0xb7c   : > { %v1943_v49 = vpack.c.bf16 %v1941_v47, %v1939_v46 }
 0xb7e   : > { %2111 = vmatprep.mubr.bf16.mxu0 %v1943_v49 }
 0xb7f   : > { %2112 = vmatmul.mubr.bf16.vlgmr.msra.gmra.mrb[16].mxu0 %v1942_v48 }
 0xc52   : > { %v2453_v29 = vpop.f32.mrb[16].mxu0 }
 0xc53   : > { %v2454_v28 = vpop.f32.mrb[17].mxu0 }
 0xc54   : > { %v2455_v31 = vadd.f32 %v2454_v28, %v2453_v29  ;;  %v2456_v50 = vpop.f32.mrb[18].mxu0 }
 0xc55   : > { %v2457_v51 = vpop.f32.mrb[19].mxu0 }
 0xc56   : > { %v2114_v52 = vadd.f32 %v2455_v31, %v2377_v0  ;;  %v2458_v53 = vadd.f32 %v2457_v51, %v2456_v50 }
 0xc58   : > { %v2117_v54 = vadd.f32 %v2458_v53, %v2377_v0  ;;  %v2120_v55 = vadd.f32 %v2114_v52, %v1784_v22 }
 0xc5a   : > { %2124 = vadd.xlane.f32.xlu1 %v2120_v55  ;;  %v2121_v56 = vadd.f32 %v2117_v54, %v1785_v23 }
 0xc5c   : > { %2126 = vadd.xlane.f32.xlu0 %v2121_v56 }
 0xce7   : > { %v2125_v57 = vpop.xlane.xlu1 %2124 }
 0xce8   : > { %v2128_v58 = vmul.f32 0.0078125, %v2125_v57 }
 0xce9   : > { %v2127_v59 = vpop.xlane.xlu0 %2126 }
 0xcea   : > { %v2130_v60 = vsub.f32 %v2120_v55, %v2128_v58  ;;  %v2129_v61 = vmul.f32 0.0078125, %v2127_v59 }
 0xcec   : > { %v2131_v62 = vsub.f32 %v2121_v56, %v2129_v61  ;;  %v2132_v63 = vmul.f32 %v2130_v60, %v2130_v60 }
 0xcee   : > { %2134 = vadd.xlane.f32.xlu1 %v2132_v63  ;;  %v2133_v1 = vmul.f32 %v2131_v62, %v2131_v62 }
 0xcf0   : > { %2136 = vadd.xlane.f32.xlu0 %v2133_v1 }
 0xd7b   : > { %v2135_v2 = vpop.xlane.xlu1 %2134 }
 0xd7c   : > { %v2138_v3 = vmul.f32 0.0078125, %v2135_v2 }
 0xd7d   : > { %v2137_v4 = vpop.xlane.xlu0 %2136 }
 0xd7e   : > { %v2140_v5 = vadd.f32 1e-05, %v2138_v3  ;;  %v2139_v6 = vmul.f32 0.0078125, %v2137_v4 }
 0xd80   : > { %2774 = vrsqrt.f32 %v2140_v5  ;;  %v2141_v7 = vadd.f32 1e-05, %v2139_v6 }
 0xd82   : > { %2776 = vrsqrt.f32 %v2141_v7 }
 0xd8a   : > { %v2775_v8 = vpop.eup %2774 }
 0xd8b   : > { %v2144_v10 = vmul.f32 %v2775_v8, %v2130_v60 }
 0xd8c   : > { %v2777_v11 = vpop.eup %2776 }
 0xd8d   : > { %v2152_v21 = vmul.f32 %v2394_v9, %v2144_v10  ;;  %v2145_v13 = vmul.f32 %v2777_v11, %v2131_v62 }
 0xd8f   : > { %v2160_v14 = vadd.f32 %v2395_v12, %v2152_v21  ;;  %v2153_v15 = vmul.f32 %v2394_v9, %v2145_v13 }
 0xd91   : > { %v2161_v16 = vadd.f32 %v2395_v12, %v2153_v15  ;;  %2162 = vst [vmem:[%s529_s16] sm:$0xff] %v2160_v14 }
 0xd93   : > { %2163 = vst [vmem:[%s529_s16 + $0x8] sm:$0xff] %v2161_v16 }
 0xd94   : > { %2963 = shalt.err (!%p2960_p8)
}
 0xd95   : > { %s2964_s1 = scalar_lea.hbm %s3658_s6, 256  ;;  %s2968_s30 = scalar_lea.hbm %s3754_s15, 512 }
 0xd96   : > { %p2965_p6 = scmp.ne.s32.totalorder %s3658_s6, %s2964_s1  ;;  %p2969_p3 = scmp.lt.u32.totalorder %s3658_s6, %s3754_s15 }
 0xd97   : > { %p2970_p0 = scmp.lt.u32.totalorder %s2968_s30, %s2964_s1  ;;  %p2972_p2 = scmp.lt.u32.totalorder %s2964_s1, %s3658_s6 }
 0xd98   : > { %p2966_p9 = pnand %p2965_p6, %p3755_p7 }
 0xd99   : > { %p2971_p5 = por %p2970_p0, %p2969_p3 }
 0xd9a   : > { %p2967_p4 = pneg %p2966_p9 }
 0xd9b   : > { %p2973_p10 = por %p2972_p2, %p2971_p5 }
 0xd9d   : > { %p2974_p1 = pnand %p2973_p10, %p2967_p4 }
 0xd9f   : > { %2977 = shalt.err (!%p2974_p1)
}
 0xda0   : > { %s3049_s11 = smov 128   ;;  %s3050_s14 = smov 8  }
 0xda1   : > { %2569 = dma.vmem_to_hbm [thread:$0]  (%p3755_p7), %s3660_s20, 256, %s3658_s6, %s2165_s19, %s3049_s11, %s3049_s11, %s3050_s14  }
 0xda2 PF: > { %s2193_s22 = sand.u32 1, %s3016_s25   ;;  %p3756_p11 = scmp.ne.s32.totalorder %s3739_s7, 0 }
 0xda3   : > { %p3757_p12 = scmp.ge.s32.totalorder %s3028_s28, 2  ;;  %s2194_s17 = scalar_lea.sflag [#allocation10], %s2193_s22 }
 0xda5   : > { %p2592_p13 = pnand %p3757_p12, %p3756_p11 }
 0xda7   : > { %3011 = dma.done.wait (!%p2592_p13), %s2194_s17, 256  }
 0xda8   : > { %3013 = vsyncadd (!%p2592_p13), %s2194_s17, 4294967040  ;;  %p29_p8 = scmp.ge.s32.totalorder %s3278_s18, 4   ;;  %s3758_s25 = smov %s3020_s26 }
 0xda9   : > { %s3759_s26 = smov %s3024_s27  ;;  %s3760_s27 = smov %s3290_s8 }
 0xdaa   : > { %s3761_s28 = smov %s3278_s18  ;;  %31 = sbr.rel (!%p29_p8) target bundleno = 16 (0x10), region = 137 }
 0xdb1   :  { %2199 = vsyncpa [#allocation9], 1 }
 0xdb2   :  { %2201 = vsyncpa [#allocation9 + $0x1], 1 }
 0xdb3   :  { %2202 = vsyncpa [#allocation12], 1 }
 0xdb4   :  { %2203 = vsyncpa [#allocation15], 1 }
 0xdb5   :  { %2204 = vsyncpa [#allocation18], 1 }
 0xdb6   :  { %2205 = vsyncpa [#allocation10], 1 }
 0xdb7   :  { %2207 = vsyncpa [#allocation10 + $0x1], 1 }

</bundles_post_ra>
